<compile_context>
chip_gen: v6e
topology: v6e:2x2x1
jax: 0.10.0
libtpu: 0.0.40
codegen_flags: <defaults>
</compile_context>

<pallas_src>
import functools
import math

import jax
import jax.numpy as jnp
from jax.experimental import pallas as pl
from jax.experimental.pallas import tpu as pltpu


def _round_up(n, m):
    return ((n + m - 1) // m) * m


# --------------------------- tiled matmul kernel ------------------------------
# y = relu?(x @ w + b): bf16 activations + bf16 weights on the MXU, f32 VMEM accumulator.

def _matmul_kernel(x_ref, w_ref, b_ref, o_ref, acc_ref, *, apply_relu):
    @pl.when(pl.program_id(2) == 0)
    def _():
        acc_ref[...] = jnp.zeros_like(acc_ref)

    acc_ref[...] += jnp.dot(x_ref[...], w_ref[...],
                            preferred_element_type=jnp.float32)

    @pl.when(pl.program_id(2) == pl.num_programs(2) - 1)
    def _():
        y = acc_ref[...] + b_ref[...]
        if apply_relu:
            y = jnp.maximum(y, 0.0)
        o_ref[...] = y.astype(o_ref.dtype)


def linear_tiled(x_bf16, w_bf16, b, *, apply_relu=False, out_dtype=jnp.float32):
    """x: (M, K) bf16, w: (K, N) bf16, b: (N,) f32 -> (M, N) out_dtype.
    K and N must be 128-multiples; 256-wide tiles are used when the dims allow (v6e/v7x MXU)."""
    M, K = x_bf16.shape
    Kw, N = w_bf16.shape
    assert K == Kw and K % 128 == 0 and N % 128 == 0
    tk = 256 if K % 256 == 0 else 128
    tn = 256 if N % 256 == 0 else 128
    tm = min(256, _round_up(M, 8))
    Mp = _round_up(M, tm)
    if Mp != M:
        x_bf16 = jnp.pad(x_bf16, ((0, Mp - M), (0, 0)))
    b2 = b.reshape(1, N)

    out = pl.pallas_call(
        functools.partial(_matmul_kernel, apply_relu=apply_relu),
        out_shape=jax.ShapeDtypeStruct((Mp, N), out_dtype),
        grid=(Mp // tm, N // tn, K // tk),
        in_specs=[
            pl.BlockSpec((tm, tk), lambda i, j, k: (i, k)),
            pl.BlockSpec((tk, tn), lambda i, j, k: (k, j)),
            pl.BlockSpec((1, tn), lambda i, j, k: (0, j)),
        ],
        out_specs=pl.BlockSpec((tm, tn), lambda i, j, k: (i, j)),
        scratch_shapes=[pltpu.VMEM((tm, tn), jnp.float32)],
        compiler_params=pltpu.CompilerParams(
            dimension_semantics=("parallel", "parallel", "arbitrary")),
    )(x_bf16, w_bf16, b2)
    return out[:M] if Mp != M else out


# --------------------------- whole-decode-loop kernel --------------------------
# grid = (max_len - 1, num_vocab_tiles).  Loop-invariant tensors are VMEM-resident
# (constant-block index_maps); w_out streams per vocab tile; all carried state is in
# VMEM scratch; the token buffer + length are resident outputs written back once.

def _decode_loop_kernel(emb_tab_ref, kT_ref, v_ref, mask_ref, wq_ref, bq_ref,
                        wo_ref, bo_ref,
                        buf_ref, len_ref,
                        emb_prev, h_scr, m_run, a_run, fin,
                        *, scale, bos, eos, pad, n_vtiles, tv):
    s = pl.program_id(0)     # decode step: produces token at position s + 1
    vj = pl.program_id(1)    # vocab tile index

    # ---- one-time init: BOS token, flags, length counter, BOS embedding ----
    @pl.when((s == 0) & (vj == 0))
    def _init():
        fin[...] = jnp.zeros_like(fin)
        len_ref[...] = jnp.ones_like(len_ref)                    # the BOS token
        bos_row = emb_tab_ref[pl.ds(bos, 1), :]                  # (1, Hp) static row
        emb_prev[...] = jnp.broadcast_to(bos_row, emb_prev.shape)
        lane = jax.lax.broadcasted_iota(jnp.int32, buf_ref.shape, 1)
        buf_ref[...] = jnp.where(lane == 0, jnp.int32(bos), jnp.int32(pad))

    # ---- per-step cross-attention over the resident K/V cache (MXU) ----
    @pl.when(vj == 0)
    def _attend():
        e = emb_prev[...]                                                    # (B, Hp) f32
        q = jnp.dot(e.astype(jnp.bfloat16), wq_ref[...],
                    preferred_element_type=jnp.float32) + bq_ref[...]        # (B, Hp) f32
        # Scores against batch-flattened K^T; cross-batch / pad / Sp-pad positions are
        # knocked out by the additive -1e9 mask (exp underflows to exactly 0).
        # TODO(synk): for large B*Sp switch to a per-batch (batched dot_general) formulation
        # to avoid the O(B^2*Sp) score matrix.
        sc = jnp.dot(q.astype(jnp.bfloat16), kT_ref[...],
                     preferred_element_type=jnp.float32) * scale + mask_ref[...]  # (B, B*Sp)
        smax = jnp.max(sc, axis=-1, keepdims=True)
        p = jnp.exp(sc - smax)
        p = p / jnp.sum(p, axis=-1, keepdims=True)       # exact divide (argmax parity)
        ctx = jnp.dot(p.astype(jnp.bfloat16), v_ref[...],
                      preferred_element_type=jnp.float32)                    # (B, Hp) f32
        h_scr[...] = e + ctx                                                 # residual
        m_run[...] = jnp.full_like(m_run, -jnp.inf)
        a_run[...] = jnp.zeros_like(a_run)

    # ---- streaming vocab tile: logits + running (max, argmax) ----
    logit = jnp.dot(h_scr[...].astype(jnp.bfloat16), wo_ref[...],
                    preferred_element_type=jnp.float32) + bo_ref[...]        # (B, TV) f32
    t_max = jnp.max(logit, axis=-1, keepdims=True)                           # (B, 1)
    lane = jax.lax.broadcasted_iota(jnp.int32, logit.shape, 1)
    t_arg = jnp.min(jnp.where(logit == t_max, lane, jnp.int32(2 ** 30)),
                    axis=-1, keepdims=True) + vj * tv                        # (B, 1) int32
    better = t_max > m_run[...]     # strict >  ->  lowest-index tie-break across tiles
    a_run[...] = jnp.where(better, t_arg, a_run[...])
    m_run[...] = jnp.where(better, t_max, m_run[...])

    # ---- finalize this decode step ----
    @pl.when(vj == n_vtiles - 1)
    def _emit():
        next_tok = a_run[...]                                                # (B, 1) int32
        all_fin_before = jnp.min(fin[...], axis=0, keepdims=True)            # (1, 1) f32
        # The reference loop breaks only AFTER the step at which every sequence has seen
        # EOS, so the emitted length grows while not-all-finished held at step entry.
        len_ref[...] = len_ref[...] + (1.0 - all_fin_before).astype(jnp.int32)
        fin[...] = jnp.maximum(fin[...], (next_tok == eos).astype(jnp.float32))
        lane_b = jax.lax.broadcasted_iota(jnp.int32, buf_ref.shape, 1)
        write_val = jnp.where(all_fin_before > 0.5, jnp.int32(pad), next_tok)
        buf_ref[...] = jnp.where(lane_b == s + 1, write_val, buf_ref[...])
        # Next-step embedding: one-hot MXU gather from the resident embedding table.
        # TODO(synk): for a large target vocab, replace the resident table + one-hot dot
        # with a manual pltpu.make_async_copy row gather from HBM (pl.ANY).
        onehot = (jax.lax.broadcasted_iota(
            jnp.int32, (next_tok.shape[0], emb_tab_ref.shape[0]), 1) == next_tok
                  ).astype(jnp.float32)                                      # (B, Vp)
        emb_prev[...] = jnp.dot(onehot, emb_tab_ref[...],
                                preferred_element_type=jnp.float32)
    # TODO(synk): steps after all sequences hit EOS still execute (masked to PAD and not
    # counted); a true in-kernel early exit would need a vector->scalar bridge for pl.when.


# --------------------------- params -------------------------------------------

def init_params(key, src_vocab, tgt_vocab, hidden):
    ks = jax.random.split(key, 8)
    s = 0.1
    return dict(
        src_emb=jax.random.normal(ks[0], (src_vocab, hidden), jnp.float32) * s,
        tgt_emb=jax.random.normal(ks[1], (tgt_vocab, hidden), jnp.float32) * s,
        w_enc=jax.random.normal(ks[2], (hidden, hidden), jnp.float32) * s,
        b_enc=jnp.zeros((hidden,), jnp.float32),
        wq=jax.random.normal(ks[3], (hidden, hidden), jnp.float32) * s,
        bq=jnp.zeros((hidden,), jnp.float32),
        wk=jax.random.normal(ks[4], (hidden, hidden), jnp.float32) * s,
        bk=jnp.zeros((hidden,), jnp.float32),
        wv=jax.random.normal(ks[5], (hidden, hidden), jnp.float32) * s,
        bv=jnp.zeros((hidden,), jnp.float32),
        w_out=jax.random.normal(ks[6], (hidden, tgt_vocab), jnp.float32) * s,
        b_out=jnp.zeros((tgt_vocab,), jnp.float32),
    )


def pad_params(params, hidden, tgt_vocab):
    """Zero-pad hidden -> 128-multiple, vocab -> 128-multiple; store weights bf16 for the MXU.
    Padded vocab bias columns get -1e9 so greedy argmax never selects them; [wk|wv] are fused."""
    Hp = _round_up(hidden, 128)
    Vp = _round_up(tgt_vocab, 128)

    def pad_mat(w, r, c):
        return jnp.pad(w, ((0, r - w.shape[0]), (0, c - w.shape[1])))

    wk = pad_mat(params['wk'], Hp, Hp)
    wv = pad_mat(params['wv'], Hp, Hp)
    return dict(
        src_emb=pad_mat(params['src_emb'], params['src_emb'].shape[0], Hp),
        tgt_emb=pad_mat(params['tgt_emb'], Vp, Hp),                       # f32, rows -> Vp
        w_enc=pad_mat(params['w_enc'], Hp, Hp).astype(jnp.bfloat16),
        b_enc=jnp.pad(params['b_enc'], (0, Hp - hidden)),
        wq=pad_mat(params['wq'], Hp, Hp).astype(jnp.bfloat16),
        bq=jnp.pad(params['bq'], (0, Hp - hidden)).reshape(1, Hp),
        w_kv=jnp.concatenate([wk, wv], axis=1).astype(jnp.bfloat16),      # (Hp, 2*Hp)
        b_kv=jnp.concatenate([jnp.pad(params['bk'], (0, Hp - hidden)),
                              jnp.pad(params['bv'], (0, Hp - hidden))]),
        w_out=pad_mat(params['w_out'], Hp, Vp).astype(jnp.bfloat16),
        b_out=jnp.pad(params['b_out'], (0, Vp - tgt_vocab),
                      constant_values=-1e9).reshape(1, Vp),
    )


# --------------------------- greedy generation --------------------------------

@functools.partial(jax.jit, static_argnames=("bos", "eos", "max_len", "pad", "hidden"))
def greedy_generate(pparams, src_input, *, bos, eos, max_len, pad, hidden):
    """Faithful port of GreedyGenerator.forward with static shapes.

    Returns (token_buffer (B, max_len) int32, final_length scalar int32); callers slice
    token_buffer[:, :final_length] to reproduce the dynamically-sized PyTorch output."""
    B, S = src_input.shape
    Hp = pparams['wq'].shape[0]
    Vp = pparams['w_out'].shape[1]
    Sp = _round_up(S, 128)
    BSp = B * Sp
    scale = 1.0 / math.sqrt(hidden)

    # ---- encoder (run once), bf16 activations into the tiled MXU kernels ----
    emb_src = jnp.take(pparams['src_emb'], src_input, axis=0)            # (B, S, Hp) f32
    x = emb_src.reshape(B * S, Hp).astype(jnp.bfloat16)
    enc = linear_tiled(x, pparams['w_enc'], pparams['b_enc'],
                       apply_relu=True, out_dtype=jnp.bfloat16)          # (B*S, Hp) bf16

    # ---- loop-invariant fused K/V projection + additive attention mask ----
    kv = linear_tiled(enc, pparams['w_kv'], pparams['b_kv'],
                      out_dtype=jnp.bfloat16)                            # (B*S, 2Hp) bf16
    k = kv[:, :Hp].reshape(B, S, Hp)
    v = kv[:, Hp:].reshape(B, S, Hp)
    k = jnp.pad(k, ((0, 0), (0, Sp - S), (0, 0))).reshape(BSp, Hp)       # bf16
    v = jnp.pad(v, ((0, 0), (0, Sp - S), (0, 0))).reshape(BSp, Hp)       # bf16
    kT = k.T                                                             # (Hp, B*Sp) bf16

    add_mask = jnp.where(src_input == pad, -1e9, 0.0).astype(jnp.float32)      # (B, S)
    add_mask = jnp.pad(add_mask, ((0, 0), (0, Sp - S)), constant_values=-1e9)  # (B, Sp)
    eye = jnp.eye(B, dtype=bool)
    mask2 = jnp.where(eye[:, :, None], add_mask[None, :, :], -1e9)       # (Bq, Bm, Sp)
    mask2 = mask2.reshape(B, BSp)                                        # key-pad + cross-batch

    # ---- single pallas_call for the whole greedy decode loop ----
    T = max_len - 1
    TV = 512 if Vp % 512 == 0 else (256 if Vp % 256 == 0 else 128)
    NV = Vp // TV

    buf, length = pl.pallas_call(
        functools.partial(_decode_loop_kernel, scale=scale, bos=bos, eos=eos,
                          pad=pad, n_vtiles=NV, tv=TV),
        out_shape=(jax.ShapeDtypeStruct((B, max_len), jnp.int32),
                   jax.ShapeDtypeStruct((1, 1), jnp.int32)),
        grid=(T, NV),
        in_specs=[
            pl.BlockSpec((Vp, Hp), lambda s, vj: (0, 0)),    # tgt embedding table (resident)
            pl.BlockSpec((Hp, BSp), lambda s, vj: (0, 0)),   # K^T  bf16 (resident)
            pl.BlockSpec((BSp, Hp), lambda s, vj: (0, 0)),   # V    bf16 (resident)
            pl.BlockSpec((B, BSp), lambda s, vj: (0, 0)),    # additive mask (resident)
            pl.BlockSpec((Hp, Hp), lambda s, vj: (0, 0)),    # wq   bf16 (resident)
            pl.BlockSpec((1, Hp), lambda s, vj: (0, 0)),     # bq   (resident)
            pl.BlockSpec((Hp, TV), lambda s, vj: (0, vj)),   # w_out tile (streamed, 2-buffered)
            pl.BlockSpec((1, TV), lambda s, vj: (0, vj)),    # b_out tile
        ],
        out_specs=(
            pl.BlockSpec((B, max_len), lambda s, vj: (0, 0)),  # token buffer (resident)
            pl.BlockSpec((1, 1), lambda s, vj: (0, 0)),        # emitted length (resident)
        ),
        scratch_shapes=[
            pltpu.VMEM((B, Hp), jnp.float32),   # previous-token embedding
            pltpu.VMEM((B, Hp), jnp.float32),   # attention output h (residual)
            pltpu.VMEM((B, 1), jnp.float32),    # running max logit
            pltpu.VMEM((B, 1), jnp.int32),      # running argmax
            pltpu.VMEM((B, 1), jnp.float32),    # per-sequence finished flags
        ],
        compiler_params=pltpu.CompilerParams(
            dimension_semantics=("arbitrary", "arbitrary"),
            vmem_limit_bytes=32 * 1024 * 1024),
    )(pparams['tgt_emb'], kT, v, mask2,
      pparams['wq'], pparams['bq'], pparams['w_out'], pparams['b_out'])

    return buf, length[0, 0]


# --------------------------- main ---------------------------------------------

if __name__ == "__main__":
    key = jax.random.PRNGKey(0)
    B, S, H = 2, 8, 32
    SRC_VOCAB, TGT_VOCAB = 32, 64
    PAD, BOS, EOS = 0, 1, 2
    MAX_LEN = 6

    pkey, dkey = jax.random.split(key)
    params = init_params(pkey, SRC_VOCAB, TGT_VOCAB, H)
    pparams = pad_params(params, H, TGT_VOCAB)

    src = jax.random.randint(dkey, (B, S), 3, SRC_VOCAB, dtype=jnp.int32)
    src = src.at[0, -2:].set(PAD)   # exercise the key-padding mask

    buf, length = greedy_generate(pparams, src, bos=BOS, eos=EOS,
                                  max_len=MAX_LEN, pad=PAD, hidden=H)
    buf = jax.block_until_ready(buf)
    length = int(length)            # single host sync at the very end
    out = buf[:, :length]

    assert out.shape[0] == B and 1 <= out.shape[1] <= MAX_LEN and int(out[0, 0]) == BOS
    print("KERNEL_OK")
</pallas_src>

<mosaic_0001>
module attributes {stable_mosaic.version = 11 : i64} {
  func.func @_matmul_kernel(%arg0: i32, %arg1: i32, %arg2: i32, %arg3: memref<16x128xbf16, #tpu.memory_space<vmem>>, %arg4: memref<128x128xbf16, #tpu.memory_space<vmem>>, %arg5: memref<1x128xf32, #tpu.memory_space<vmem>>, %arg6: memref<16x128xbf16, #tpu.memory_space<vmem>>, %arg7: memref<16x128xf32, #tpu.memory_space<vmem>>) attributes {dimension_semantics = [#tpu.dimension_semantics<parallel>, #tpu.dimension_semantics<parallel>, #tpu.dimension_semantics<arbitrary>], iteration_bounds = array<i64: 1, 1, 1>, scalar_prefetch = 0 : i64, scratch_operands = 1 : i64, tpu.core_type = #tpu.core_type<tc>, window_params = [{transform_indices = @transform_0, window_bounds = array<i64: 16, 128>}, {transform_indices = @transform_1, window_bounds = array<i64: 128, 128>}, {transform_indices = @transform_2, window_bounds = array<i64: 1, 128>}, {transform_indices = @transform_3, window_bounds = array<i64: 16, 128>}]} {
    %c0_i32 = arith.constant 0 : i32
    %0 = arith.cmpi eq, %arg2, %c0_i32 : i32
    %1 = arith.extui %0 : i1 to i32
    %c0_i32_0 = arith.constant 0 : i32
    %2 = arith.cmpi ne, %1, %c0_i32_0 : i32
    scf.if %2 {
      %cst_10 = arith.constant 0.000000e+00 : f32
      %12 = vector.broadcast %cst_10 : f32 to vector<16x128xf32>
      %c0_11 = arith.constant 0 : index
      %c0_12 = arith.constant 0 : index
      %13 = vector.load %arg7[%c0_11, %c0_12] : memref<16x128xf32, #tpu.memory_space<vmem>>, vector<16x128xf32>
      tpu.vector_store %arg7[%c0_11, %c0_12], %12 {strides = array<i32>} : memref<16x128xf32, #tpu.memory_space<vmem>>, vector<16x128xf32>,
    } else {
    }
    %c0 = arith.constant 0 : index
    %c0_1 = arith.constant 0 : index
    %3 = vector.load %arg7[%c0, %c0_1] : memref<16x128xf32, #tpu.memory_space<vmem>>, vector<16x128xf32>
    %c0_2 = arith.constant 0 : index
    %c0_3 = arith.constant 0 : index
    %4 = vector.load %arg3[%c0_2, %c0_3] : memref<16x128xbf16, #tpu.memory_space<vmem>>, vector<16x128xbf16>
    %c0_4 = arith.constant 0 : index
    %c0_5 = arith.constant 0 : index
    %5 = vector.load %arg4[%c0_4, %c0_5] : memref<128x128xbf16, #tpu.memory_space<vmem>>, vector<128x128xbf16>
    %cst = arith.constant dense<0.000000e+00> : vector<16x128xf32>
    %6 = tpu.matmul %4, %5, %cst {dimension_numbers = #tpu.dot_dimension_numbers<[1], [0], [0], [1], [0, 0, 1, 1], [], []>} : vector<16x128xbf16>, vector<128x128xbf16>, vector<16x128xf32> -> vector<16x128xf32>
    %7 = arith.addf %3, %6 : vector<16x128xf32>
    %c0_6 = arith.constant 0 : index
    %c0_7 = arith.constant 0 : index
    %8 = vector.load %arg7[%c0_6, %c0_7] : memref<16x128xf32, #tpu.memory_space<vmem>>, vector<16x128xf32>
    tpu.vector_store %arg7[%c0_6, %c0_7], %7 {strides = array<i32>} : memref<16x128xf32, #tpu.memory_space<vmem>>, vector<16x128xf32>,
    %c0_i32_8 = arith.constant 0 : i32
    %9 = arith.cmpi eq, %arg2, %c0_i32_8 : i32
    %10 = arith.extui %9 : i1 to i32
    %c0_i32_9 = arith.constant 0 : i32
    %11 = arith.cmpi ne, %10, %c0_i32_9 : i32
    scf.if %11 {
      %c0_10 = arith.constant 0 : index
      %c0_11 = arith.constant 0 : index
      %12 = vector.load %arg7[%c0_10, %c0_11] : memref<16x128xf32, #tpu.memory_space<vmem>>, vector<16x128xf32>
      %c0_12 = arith.constant 0 : index
      %c0_13 = arith.constant 0 : index
      %13 = vector.load %arg5[%c0_12, %c0_13] : memref<1x128xf32, #tpu.memory_space<vmem>>, vector<1x128xf32>
      %14 = vector.broadcast %13 : vector<1x128xf32> to vector<16x128xf32>
      %15 = arith.addf %12, %14 : vector<16x128xf32>
      %cst_14 = arith.constant 0.000000e+00 : f32
      %16 = vector.broadcast %cst_14 : f32 to vector<16x128xf32>
      %17 = arith.maximumf %15, %16 : vector<16x128xf32>
      %18 = arith.truncf %17 : vector<16x128xf32> to vector<16x128xbf16>
      %c0_15 = arith.constant 0 : index
      %c0_16 = arith.constant 0 : index
      %19 = vector.load %arg6[%c0_15, %c0_16] : memref<16x128xbf16, #tpu.memory_space<vmem>>, vector<16x128xbf16>
      tpu.vector_store %arg6[%c0_15, %c0_16], %18 {strides = array<i32>} : memref<16x128xbf16, #tpu.memory_space<vmem>>, vector<16x128xbf16>,
    } else {
    }
    return
  }
  func.func @transform_0(%arg0: i32, %arg1: i32, %arg2: i32) -> (i32, i32) {
    %c0_i32 = arith.constant 0 : i32
    return %arg0, %arg2 : i32, i32
  }
  func.func @transform_1(%arg0: i32, %arg1: i32, %arg2: i32) -> (i32, i32) {
    %c0_i32 = arith.constant 0 : i32
    return %arg2, %arg1 : i32, i32
  }
  func.func @transform_2(%arg0: i32, %arg1: i32, %arg2: i32) -> (i32, i32) {
    %c0_i32 = arith.constant 0 : i32
    %c0_i32_0 = arith.constant 0 : i32
    return %c0_i32, %arg1 : i32, i32
  }
  func.func @transform_3(%arg0: i32, %arg1: i32, %arg2: i32) -> (i32, i32) {
    %c0_i32 = arith.constant 0 : i32
    return %arg0, %arg1 : i32, i32
  }
}

module attributes {stable_mosaic.version = 11 : i64} {
  func.func @_matmul_kernel(%arg0: i32, %arg1: i32, %arg2: i32, %arg3: memref<16x128xbf16, #tpu.memory_space<vmem>>, %arg4: memref<128x256xbf16, #tpu.memory_space<vmem>>, %arg5: memref<1x256xf32, #tpu.memory_space<vmem>>, %arg6: memref<16x256xbf16, #tpu.memory_space<vmem>>, %arg7: memref<16x256xf32, #tpu.memory_space<vmem>>) attributes {dimension_semantics = [#tpu.dimension_semantics<parallel>, #tpu.dimension_semantics<parallel>, #tpu.dimension_semantics<arbitrary>], iteration_bounds = array<i64: 1, 1, 1>, scalar_prefetch = 0 : i64, scratch_operands = 1 : i64, tpu.core_type = #tpu.core_type<tc>, window_params = [{transform_indices = @transform_0, window_bounds = array<i64: 16, 128>}, {transform_indices = @transform_1, window_bounds = array<i64: 128, 256>}, {transform_indices = @transform_2, window_bounds = array<i64: 1, 256>}, {transform_indices = @transform_3, window_bounds = array<i64: 16, 256>}]} {
    %c0_i32 = arith.constant 0 : i32
    %0 = arith.cmpi eq, %arg2, %c0_i32 : i32
    %1 = arith.extui %0 : i1 to i32
    %c0_i32_0 = arith.constant 0 : i32
    %2 = arith.cmpi ne, %1, %c0_i32_0 : i32
    scf.if %2 {
      %cst_10 = arith.constant 0.000000e+00 : f32
      %12 = vector.broadcast %cst_10 : f32 to vector<16x256xf32>
      %c0_11 = arith.constant 0 : index
      %c0_12 = arith.constant 0 : index
      %13 = vector.load %arg7[%c0_11, %c0_12] : memref<16x256xf32, #tpu.memory_space<vmem>>, vector<16x256xf32>
      tpu.vector_store %arg7[%c0_11, %c0_12], %12 {strides = array<i32>} : memref<16x256xf32, #tpu.memory_space<vmem>>, vector<16x256xf32>,
    } else {
    }
    %c0 = arith.constant 0 : index
    %c0_1 = arith.constant 0 : index
    %3 = vector.load %arg7[%c0, %c0_1] : memref<16x256xf32, #tpu.memory_space<vmem>>, vector<16x256xf32>
    %c0_2 = arith.constant 0 : index
    %c0_3 = arith.constant 0 : index
    %4 = vector.load %arg3[%c0_2, %c0_3] : memref<16x128xbf16, #tpu.memory_space<vmem>>, vector<16x128xbf16>
    %c0_4 = arith.constant 0 : index
    %c0_5 = arith.constant 0 : index
    %5 = vector.load %arg4[%c0_4, %c0_5] : memref<128x256xbf16, #tpu.memory_space<vmem>>, vector<128x256xbf16>
    %cst = arith.constant dense<0.000000e+00> : vector<16x256xf32>
    %6 = tpu.matmul %4, %5, %cst {dimension_numbers = #tpu.dot_dimension_numbers<[1], [0], [0], [1], [0, 0, 1, 1], [], []>} : vector<16x128xbf16>, vector<128x256xbf16>, vector<16x256xf32> -> vector<16x256xf32>
    %7 = arith.addf %3, %6 : vector<16x256xf32>
    %c0_6 = arith.constant 0 : index
    %c0_7 = arith.constant 0 : index
    %8 = vector.load %arg7[%c0_6, %c0_7] : memref<16x256xf32, #tpu.memory_space<vmem>>, vector<16x256xf32>
    tpu.vector_store %arg7[%c0_6, %c0_7], %7 {strides = array<i32>} : memref<16x256xf32, #tpu.memory_space<vmem>>, vector<16x256xf32>,
    %c0_i32_8 = arith.constant 0 : i32
    %9 = arith.cmpi eq, %arg2, %c0_i32_8 : i32
    %10 = arith.extui %9 : i1 to i32
    %c0_i32_9 = arith.constant 0 : i32
    %11 = arith.cmpi ne, %10, %c0_i32_9 : i32
    scf.if %11 {
      %c0_10 = arith.constant 0 : index
      %c0_11 = arith.constant 0 : index
      %12 = vector.load %arg7[%c0_10, %c0_11] : memref<16x256xf32, #tpu.memory_space<vmem>>, vector<16x256xf32>
      %c0_12 = arith.constant 0 : index
      %c0_13 = arith.constant 0 : index
      %13 = vector.load %arg5[%c0_12, %c0_13] : memref<1x256xf32, #tpu.memory_space<vmem>>, vector<1x256xf32>
      %14 = vector.broadcast %13 : vector<1x256xf32> to vector<16x256xf32>
      %15 = arith.addf %12, %14 : vector<16x256xf32>
      %16 = arith.truncf %15 : vector<16x256xf32> to vector<16x256xbf16>
      %c0_14 = arith.constant 0 : index
      %c0_15 = arith.constant 0 : index
      %17 = vector.load %arg6[%c0_14, %c0_15] : memref<16x256xbf16, #tpu.memory_space<vmem>>, vector<16x256xbf16>
      tpu.vector_store %arg6[%c0_14, %c0_15], %16 {strides = array<i32>} : memref<16x256xbf16, #tpu.memory_space<vmem>>, vector<16x256xbf16>,
    } else {
    }
    return
  }
  func.func @transform_0(%arg0: i32, %arg1: i32, %arg2: i32) -> (i32, i32) {
    %c0_i32 = arith.constant 0 : i32
    return %arg0, %arg2 : i32, i32
  }
  func.func @transform_1(%arg0: i32, %arg1: i32, %arg2: i32) -> (i32, i32) {
    %c0_i32 = arith.constant 0 : i32
    return %arg2, %arg1 : i32, i32
  }
  func.func @transform_2(%arg0: i32, %arg1: i32, %arg2: i32) -> (i32, i32) {
    %c0_i32 = arith.constant 0 : i32
    %c0_i32_0 = arith.constant 0 : i32
    return %c0_i32, %arg1 : i32, i32
  }
  func.func @transform_3(%arg0: i32, %arg1: i32, %arg2: i32) -> (i32, i32) {
    %c0_i32 = arith.constant 0 : i32
    return %arg0, %arg1 : i32, i32
  }
}

module attributes {stable_mosaic.version = 11 : i64} {
  func.func @_decode_loop_kernel(%arg0: i32, %arg1: i32, %arg2: memref<128x128xf32, #tpu.memory_space<vmem>>, %arg3: memref<128x256xbf16, #tpu.memory_space<vmem>>, %arg4: memref<256x128xbf16, #tpu.memory_space<vmem>>, %arg5: memref<2x256xf32, #tpu.memory_space<vmem>>, %arg6: memref<128x128xbf16, #tpu.memory_space<vmem>>, %arg7: memref<1x128xf32, #tpu.memory_space<vmem>>, %arg8: memref<128x128xbf16, #tpu.memory_space<vmem>>, %arg9: memref<1x128xf32, #tpu.memory_space<vmem>>, %arg10: memref<2x6xi32, #tpu.memory_space<vmem>>, %arg11: memref<1x1xi32, #tpu.memory_space<vmem>>, %arg12: memref<2x128xf32, #tpu.memory_space<vmem>>, %arg13: memref<2x128xf32, #tpu.memory_space<vmem>>, %arg14: memref<2x1xf32, #tpu.memory_space<vmem>>, %arg15: memref<2x1xi32, #tpu.memory_space<vmem>>, %arg16: memref<2x1xf32, #tpu.memory_space<vmem>>) attributes {dimension_semantics = [#tpu.dimension_semantics<arbitrary>, #tpu.dimension_semantics<arbitrary>], iteration_bounds = array<i64: 5, 1>, scalar_prefetch = 0 : i64, scratch_operands = 5 : i64, tpu.core_type = #tpu.core_type<tc>, window_params = [{pipeline_mode = #tpu.pipeline_mode<synchronous>, transform_indices = @transform_0, window_bounds = array<i64: 128, 128>}, {pipeline_mode = #tpu.pipeline_mode<synchronous>, transform_indices = @transform_1, window_bounds = array<i64: 128, 256>}, {pipeline_mode = #tpu.pipeline_mode<synchronous>, transform_indices = @transform_2, window_bounds = array<i64: 256, 128>}, {pipeline_mode = #tpu.pipeline_mode<synchronous>, transform_indices = @transform_3, window_bounds = array<i64: 2, 256>}, {pipeline_mode = #tpu.pipeline_mode<synchronous>, transform_indices = @transform_4, window_bounds = array<i64: 128, 128>}, {pipeline_mode = #tpu.pipeline_mode<synchronous>, transform_indices = @transform_5, window_bounds = array<i64: 1, 128>}, {transform_indices = @transform_6, window_bounds = array<i64: 128, 128>}, {transform_indices = @transform_7, window_bounds = array<i64: 1, 128>}, {pipeline_mode = #tpu.pipeline_mode<synchronous>, transform_indices = @transform_8, window_bounds = array<i64: 2, 6>}, {pipeline_mode = #tpu.pipeline_mode<synchronous>, transform_indices = @transform_9, window_bounds = array<i64: 1, 1>}]} {
    %c0_i32 = arith.constant 0 : i32
    %0 = arith.cmpi eq, %arg0, %c0_i32 : i32
    %c0_i32_0 = arith.constant 0 : i32
    %1 = arith.cmpi eq, %arg1, %c0_i32_0 : i32
    %2 = arith.andi %0, %1 : i1
    %3 = arith.extui %2 : i1 to i32
    %c0_i32_1 = arith.constant 0 : i32
    %4 = arith.cmpi ne, %3, %c0_i32_1 : i32
    scf.if %4 {
      %cst_23 = arith.constant 0.000000e+00 : f32
      %38 = vector.broadcast %cst_23 : f32 to vector<2x1xf32>
      %c0_24 = arith.constant 0 : index
      %c0_25 = arith.constant 0 : index
      %39 = vector.load %arg16[%c0_24, %c0_25] : memref<2x1xf32, #tpu.memory_space<vmem>>, vector<2x1xf32>
      tpu.vector_store %arg16[%c0_24, %c0_25], %38 {strides = array<i32>} : memref<2x1xf32, #tpu.memory_space<vmem>>, vector<2x1xf32>,
      %c1_i32 = arith.constant 1 : i32
      %40 = vector.broadcast %c1_i32 : i32 to vector<1x1xi32>
      %c0_26 = arith.constant 0 : index
      %c0_27 = arith.constant 0 : index
      %41 = vector.load %arg11[%c0_26, %c0_27] : memref<1x1xi32, #tpu.memory_space<vmem>>, vector<1x1xi32>
      tpu.vector_store %arg11[%c0_26, %c0_27], %40 {strides = array<i32>} : memref<1x1xi32, #tpu.memory_space<vmem>>, vector<1x1xi32>,
      %c1 = arith.constant 1 : index
      %c0_28 = arith.constant 0 : index
      %42 = vector.load %arg2[%c1, %c0_28] : memref<128x128xf32, #tpu.memory_space<vmem>>, vector<1x128xf32>
      %43 = vector.shape_cast %42 : vector<1x128xf32> to vector<1x128xf32>
      %44 = vector.broadcast %43 : vector<1x128xf32> to vector<2x128xf32>
      %c0_29 = arith.constant 0 : index
      %c0_30 = arith.constant 0 : index
      %45 = vector.load %arg12[%c0_29, %c0_30] : memref<2x128xf32, #tpu.memory_space<vmem>>, vector<2x128xf32>
      tpu.vector_store %arg12[%c0_29, %c0_30], %44 {strides = array<i32>} : memref<2x128xf32, #tpu.memory_space<vmem>>, vector<2x128xf32>,
      %46 = tpu.iota {dimensions = array<i32: 1>} : vector<2x6xi32>
      %c0_i32_31 = arith.constant 0 : i32
      %47 = vector.broadcast %c0_i32_31 : i32 to vector<2x6xi32>
      %48 = arith.cmpi eq, %46, %47 : vector<2x6xi32>
      %c1_i32_32 = arith.constant 1 : i32
      %c0_i32_33 = arith.constant 0 : i32
      %49 = vector.broadcast %c1_i32_32 : i32 to vector<2x6xi32>
      %50 = vector.broadcast %c0_i32_33 : i32 to vector<2x6xi32>
      %51 = arith.select %48, %49, %50 : vector<2x6xi1>, vector<2x6xi32>
      %c0_34 = arith.constant 0 : index
      %c0_35 = arith.constant 0 : index
      %52 = vector.load %arg10[%c0_34, %c0_35] : memref<2x6xi32, #tpu.memory_space<vmem>>, vector<2x6xi32>
      tpu.vector_store %arg10[%c0_34, %c0_35], %51 {strides = array<i32>} : memref<2x6xi32, #tpu.memory_space<vmem>>, vector<2x6xi32>,
    } else {
    }
    %c0_i32_2 = arith.constant 0 : i32
    %5 = arith.cmpi eq, %arg1, %c0_i32_2 : i32
    %6 = arith.extui %5 : i1 to i32
    %c0_i32_3 = arith.constant 0 : i32
    %7 = arith.cmpi ne, %6, %c0_i32_3 : i32
    scf.if %7 {
      %c0_23 = arith.constant 0 : index
      %c0_24 = arith.constant 0 : index
      %38 = vector.load %arg12[%c0_23, %c0_24] : memref<2x128xf32, #tpu.memory_space<vmem>>, vector<2x128xf32>
      %39 = arith.truncf %38 : vector<2x128xf32> to vector<2x128xbf16>
      %c0_25 = arith.constant 0 : index
      %c0_26 = arith.constant 0 : index
      %40 = vector.load %arg6[%c0_25, %c0_26] : memref<128x128xbf16, #tpu.memory_space<vmem>>, vector<128x128xbf16>
      %cst_27 = arith.constant dense<0.000000e+00> : vector<2x128xf32>
      %41 = tpu.matmul %39, %40, %cst_27 {dimension_numbers = #tpu.dot_dimension_numbers<[1], [0], [0], [1], [0, 0, 1, 1], [], []>} : vector<2x128xbf16>, vector<128x128xbf16>, vector<2x128xf32> -> vector<2x128xf32>
      %c0_28 = arith.constant 0 : index
      %c0_29 = arith.constant 0 : index
      %42 = vector.load %arg7[%c0_28, %c0_29] : memref<1x128xf32, #tpu.memory_space<vmem>>, vector<1x128xf32>
      %43 = vector.broadcast %42 : vector<1x128xf32> to vector<2x128xf32>
      %44 = arith.addf %41, %43 : vector<2x128xf32>
      %45 = arith.truncf %44 : vector<2x128xf32> to vector<2x128xbf16>
      %c0_30 = arith.constant 0 : index
      %c0_31 = arith.constant 0 : index
      %46 = vector.load %arg3[%c0_30, %c0_31] : memref<128x256xbf16, #tpu.memory_space<vmem>>, vector<128x256xbf16>
      %cst_32 = arith.constant dense<0.000000e+00> : vector<2x256xf32>
      %47 = tpu.matmul %45, %46, %cst_32 {dimension_numbers = #tpu.dot_dimension_numbers<[1], [0], [0], [1], [0, 0, 1, 1], [], []>} : vector<2x128xbf16>, vector<128x256xbf16>, vector<2x256xf32> -> vector<2x256xf32>
      %cst_33 = arith.constant 0.176776692 : f32
      %48 = vector.broadcast %cst_33 : f32 to vector<2x256xf32>
      %49 = arith.mulf %47, %48 : vector<2x256xf32>
      %c0_34 = arith.constant 0 : index
      %c0_35 = arith.constant 0 : index
      %50 = vector.load %arg5[%c0_34, %c0_35] : memref<2x256xf32, #tpu.memory_space<vmem>>, vector<2x256xf32>
      %51 = arith.addf %49, %50 : vector<2x256xf32>
      %cst_36 = arith.constant dense<0xFF800000> : vector<2xf32>
      %52 = vector.multi_reduction <maximumf>, %51, %cst_36 [1] : vector<2x256xf32> to vector<2xf32>
      %53 = vector.shape_cast %52 : vector<2xf32> to vector<2x1xf32>
      %54 = vector.broadcast %53 : vector<2x1xf32> to vector<2x256xf32>
      %55 = arith.subf %51, %54 : vector<2x256xf32>
      %56 = math.exp %55 : vector<2x256xf32>
      %cst_37 = arith.constant dense<0.000000e+00> : vector<2xf32>
      %57 = vector.multi_reduction <add>, %56, %cst_37 [1] : vector<2x256xf32> to vector<2xf32>
      %58 = vector.shape_cast %57 : vector<2xf32> to vector<2x1xf32>
      %59 = vector.broadcast %58 : vector<2x1xf32> to vector<2x256xf32>
      %60 = arith.divf %56, %59 : vector<2x256xf32>
      %61 = arith.truncf %60 : vector<2x256xf32> to vector<2x256xbf16>
      %c0_38 = arith.constant 0 : index
      %c0_39 = arith.constant 0 : index
      %62 = vector.load %arg4[%c0_38, %c0_39] : memref<256x128xbf16, #tpu.memory_space<vmem>>, vector<256x128xbf16>
      %cst_40 = arith.constant dense<0.000000e+00> : vector<2x128xf32>
      %63 = tpu.matmul %61, %62, %cst_40 {dimension_numbers = #tpu.dot_dimension_numbers<[1], [0], [0], [1], [0, 0, 1, 1], [], []>} : vector<2x256xbf16>, vector<256x128xbf16>, vector<2x128xf32> -> vector<2x128xf32>
      %64 = arith.addf %38, %63 : vector<2x128xf32>
      %c0_41 = arith.constant 0 : index
      %c0_42 = arith.constant 0 : index
      %65 = vector.load %arg13[%c0_41, %c0_42] : memref<2x128xf32, #tpu.memory_space<vmem>>, vector<2x128xf32>
      tpu.vector_store %arg13[%c0_41, %c0_42], %64 {strides = array<i32>} : memref<2x128xf32, #tpu.memory_space<vmem>>, vector<2x128xf32>,
      %cst_43 = arith.constant 0xFF800000 : f32
      %66 = vector.broadcast %cst_43 : f32 to vector<2x1xf32>
      %c0_44 = arith.constant 0 : index
      %c0_45 = arith.constant 0 : index
      %67 = vector.load %arg14[%c0_44, %c0_45] : memref<2x1xf32, #tpu.memory_space<vmem>>, vector<2x1xf32>
      tpu.vector_store %arg14[%c0_44, %c0_45], %66 {strides = array<i32>} : memref<2x1xf32, #tpu.memory_space<vmem>>, vector<2x1xf32>,
      %c0_i32_46 = arith.constant 0 : i32
      %68 = vector.broadcast %c0_i32_46 : i32 to vector<2x1xi32>
      %c0_47 = arith.constant 0 : index
      %c0_48 = arith.constant 0 : index
      %69 = vector.load %arg15[%c0_47, %c0_48] : memref<2x1xi32, #tpu.memory_space<vmem>>, vector<2x1xi32>
      tpu.vector_store %arg15[%c0_47, %c0_48], %68 {strides = array<i32>} : memref<2x1xi32, #tpu.memory_space<vmem>>, vector<2x1xi32>,
    } else {
    }
    %c0 = arith.constant 0 : index
    %c0_4 = arith.constant 0 : index
    %8 = vector.load %arg13[%c0, %c0_4] : memref<2x128xf32, #tpu.memory_space<vmem>>, vector<2x128xf32>
    %9 = arith.truncf %8 : vector<2x128xf32> to vector<2x128xbf16>
    %c0_5 = arith.constant 0 : index
    %c0_6 = arith.constant 0 : index
    %10 = vector.load %arg8[%c0_5, %c0_6] : memref<128x128xbf16, #tpu.memory_space<vmem>>, vector<128x128xbf16>
    %cst = arith.constant dense<0.000000e+00> : vector<2x128xf32>
    %11 = tpu.matmul %9, %10, %cst {dimension_numbers = #tpu.dot_dimension_numbers<[1], [0], [0], [1], [0, 0, 1, 1], [], []>} : vector<2x128xbf16>, vector<128x128xbf16>, vector<2x128xf32> -> vector<2x128xf32>
    %c0_7 = arith.constant 0 : index
    %c0_8 = arith.constant 0 : index
    %12 = vector.load %arg9[%c0_7, %c0_8] : memref<1x128xf32, #tpu.memory_space<vmem>>, vector<1x128xf32>
    %13 = vector.broadcast %12 : vector<1x128xf32> to vector<2x128xf32>
    %14 = arith.addf %11, %13 : vector<2x128xf32>
    %cst_9 = arith.constant dense<0xFF800000> : vector<2xf32>
    %15 = vector.multi_reduction <maximumf>, %14, %cst_9 [1] : vector<2x128xf32> to vector<2xf32>
    %16 = vector.shape_cast %15 : vector<2xf32> to vector<2x1xf32>
    %17 = tpu.iota {dimensions = array<i32: 1>} : vector<2x128xi32>
    %18 = vector.broadcast %16 : vector<2x1xf32> to vector<2x128xf32>
    %19 = arith.cmpf oeq, %14, %18 : vector<2x128xf32>
    %c1073741824_i32 = arith.constant 1073741824 : i32
    %20 = vector.broadcast %c1073741824_i32 : i32 to vector<2x128xi32>
    %21 = arith.select %19, %17, %20 : vector<2x128xi1>, vector<2x128xi32>
    %cst_10 = arith.constant dense<2147483647> : vector<2xi32>
    %22 = vector.multi_reduction <minsi>, %21, %cst_10 [1] : vector<2x128xi32> to vector<2xi32>
    %23 = vector.shape_cast %22 : vector<2xi32> to vector<2x1xi32>
    %c128_i32 = arith.constant 128 : i32
    %24 = arith.muli %arg1, %c128_i32 : i32
    %25 = vector.broadcast %24 : i32 to vector<2x1xi32>
    %26 = arith.addi %23, %25 : vector<2x1xi32>
    %c0_11 = arith.constant 0 : index
    %c0_12 = arith.constant 0 : index
    %27 = vector.load %arg14[%c0_11, %c0_12] : memref<2x1xf32, #tpu.memory_space<vmem>>, vector<2x1xf32>
    %28 = arith.cmpf ogt, %16, %27 : vector<2x1xf32>
    %c0_13 = arith.constant 0 : index
    %c0_14 = arith.constant 0 : index
    %29 = vector.load %arg15[%c0_13, %c0_14] : memref<2x1xi32, #tpu.memory_space<vmem>>, vector<2x1xi32>
    %30 = arith.select %28, %26, %29 : vector<2x1xi1>, vector<2x1xi32>
    %c0_15 = arith.constant 0 : index
    %c0_16 = arith.constant 0 : index
    %31 = vector.load %arg15[%c0_15, %c0_16] : memref<2x1xi32, #tpu.memory_space<vmem>>, vector<2x1xi32>
    tpu.vector_store %arg15[%c0_15, %c0_16], %30 {strides = array<i32>} : memref<2x1xi32, #tpu.memory_space<vmem>>, vector<2x1xi32>,
    %c0_17 = arith.constant 0 : index
    %c0_18 = arith.constant 0 : index
    %32 = vector.load %arg14[%c0_17, %c0_18] : memref<2x1xf32, #tpu.memory_space<vmem>>, vector<2x1xf32>
    %33 = arith.select %28, %16, %32 : vector<2x1xi1>, vector<2x1xf32>
    %c0_19 = arith.constant 0 : index
    %c0_20 = arith.constant 0 : index
    %34 = vector.load %arg14[%c0_19, %c0_20] : memref<2x1xf32, #tpu.memory_space<vmem>>, vector<2x1xf32>
    tpu.vector_store %arg14[%c0_19, %c0_20], %33 {strides = array<i32>} : memref<2x1xf32, #tpu.memory_space<vmem>>, vector<2x1xf32>,
    %c0_i32_21 = arith.constant 0 : i32
    %35 = arith.cmpi eq, %arg1, %c0_i32_21 : i32
    %36 = arith.extui %35 : i1 to i32
    %c0_i32_22 = arith.constant 0 : i32
    %37 = arith.cmpi ne, %36, %c0_i32_22 : i32
    scf.if %37 {
      %c0_23 = arith.constant 0 : index
      %c0_24 = arith.constant 0 : index
      %38 = vector.load %arg15[%c0_23, %c0_24] : memref<2x1xi32, #tpu.memory_space<vmem>>, vector<2x1xi32>
      %c0_25 = arith.constant 0 : index
      %c0_26 = arith.constant 0 : index
      %39 = vector.load %arg16[%c0_25, %c0_26] : memref<2x1xf32, #tpu.memory_space<vmem>>, vector<2x1xf32>
      %cst_27 = arith.constant dense<0x7F800000> : vector<1xf32>
      %40 = vector.multi_reduction <minimumf>, %39, %cst_27 [0] : vector<2x1xf32> to vector<1xf32>
      %41 = vector.shape_cast %40 : vector<1xf32> to vector<1x1xf32>
      %c0_28 = arith.constant 0 : index
      %c0_29 = arith.constant 0 : index
      %42 = vector.load %arg11[%c0_28, %c0_29] : memref<1x1xi32, #tpu.memory_space<vmem>>, vector<1x1xi32>
      %cst_30 = arith.constant 1.000000e+00 : f32
      %43 = vector.broadcast %cst_30 : f32 to vector<1x1xf32>
      %44 = arith.subf %43, %41 : vector<1x1xf32>
      %45 = arith.fptosi %44 : vector<1x1xf32> to vector<1x1xi32>
      %46 = arith.addi %42, %45 : vector<1x1xi32>
      %c0_31 = arith.constant 0 : index
      %c0_32 = arith.constant 0 : index
      %47 = vector.load %arg11[%c0_31, %c0_32] : memref<1x1xi32, #tpu.memory_space<vmem>>, vector<1x1xi32>
      tpu.vector_store %arg11[%c0_31, %c0_32], %46 {strides = array<i32>} : memref<1x1xi32, #tpu.memory_space<vmem>>, vector<1x1xi32>,
      %c0_33 = arith.constant 0 : index
      %c0_34 = arith.constant 0 : index
      %48 = vector.load %arg16[%c0_33, %c0_34] : memref<2x1xf32, #tpu.memory_space<vmem>>, vector<2x1xf32>
      %c2_i32 = arith.constant 2 : i32
      %49 = vector.broadcast %c2_i32 : i32 to vector<2x1xi32>
      %50 = arith.cmpi eq, %38, %49 : vector<2x1xi32>
      %51 = arith.extui %50 : vector<2x1xi1> to vector<2x1xi32>
      %52 = arith.sitofp %51 : vector<2x1xi32> to vector<2x1xf32>
      %53 = arith.maximumf %48, %52 : vector<2x1xf32>
      %c0_35 = arith.constant 0 : index
      %c0_36 = arith.constant 0 : index
      %54 = vector.load %arg16[%c0_35, %c0_36] : memref<2x1xf32, #tpu.memory_space<vmem>>, vector<2x1xf32>
      tpu.vector_store %arg16[%c0_35, %c0_36], %53 {strides = array<i32>} : memref<2x1xf32, #tpu.memory_space<vmem>>, vector<2x1xf32>,
      %55 = tpu.iota {dimensions = array<i32: 1>} : vector<2x6xi32>
      %cst_37 = arith.constant 5.000000e-01 : f32
      %56 = vector.broadcast %cst_37 : f32 to vector<1x1xf32>
      %57 = arith.cmpf ogt, %41, %56 : vector<1x1xf32>
      %c0_i32_38 = arith.constant 0 : i32
      %58 = vector.shape_cast %57 : vector<1x1xi1> to vector<1x1xi1>
      %59 = vector.broadcast %58 : vector<1x1xi1> to vector<2x1xi1>
      %60 = vector.broadcast %c0_i32_38 : i32 to vector<2x1xi32>
      %61 = arith.select %59, %60, %38 : vector<2x1xi1>, vector<2x1xi32>
      %c1_i32 = arith.constant 1 : i32
      %62 = arith.addi %arg0, %c1_i32 : i32
      %63 = vector.broadcast %62 : i32 to vector<2x6xi32>
      %64 = arith.cmpi eq, %55, %63 : vector<2x6xi32>
      %c0_39 = arith.constant 0 : index
      %c0_40 = arith.constant 0 : index
      %65 = vector.load %arg10[%c0_39, %c0_40] : memref<2x6xi32, #tpu.memory_space<vmem>>, vector<2x6xi32>
      %66 = vector.shape_cast %61 : vector<2x1xi32> to vector<2x1xi32>
      %67 = vector.broadcast %66 : vector<2x1xi32> to vector<2x6xi32>
      %68 = arith.select %64, %67, %65 : vector<2x6xi1>, vector<2x6xi32>
      %c0_41 = arith.constant 0 : index
      %c0_42 = arith.constant 0 : index
      %69 = vector.load %arg10[%c0_41, %c0_42] : memref<2x6xi32, #tpu.memory_space<vmem>>, vector<2x6xi32>
      tpu.vector_store %arg10[%c0_41, %c0_42], %68 {strides = array<i32>} : memref<2x6xi32, #tpu.memory_space<vmem>>, vector<2x6xi32>,
      %70 = tpu.iota {dimensions = array<i32: 1>} : vector<2x128xi32>
      %71 = vector.broadcast %38 : vector<2x1xi32> to vector<2x128xi32>
      %72 = arith.cmpi eq, %70, %71 : vector<2x128xi32>
      %73 = arith.extui %72 : vector<2x128xi1> to vector<2x128xi32>
      %74 = arith.sitofp %73 : vector<2x128xi32> to vector<2x128xf32>
      %c0_43 = arith.constant 0 : index
      %c0_44 = arith.constant 0 : index
      %75 = vector.load %arg2[%c0_43, %c0_44] : memref<128x128xf32, #tpu.memory_space<vmem>>, vector<128x128xf32>
      %cst_45 = arith.constant dense<0.000000e+00> : vector<2x128xf32>
      %76 = tpu.matmul %74, %75, %cst_45 {dimension_numbers = #tpu.dot_dimension_numbers<[1], [0], [0], [1], [0, 0, 1, 1], [], []>} : vector<2x128xf32>, vector<128x128xf32>, vector<2x128xf32> -> vector<2x128xf32>
      %c0_46 = arith.constant 0 : index
      %c0_47 = arith.constant 0 : index
      %77 = vector.load %arg12[%c0_46, %c0_47] : memref<2x128xf32, #tpu.memory_space<vmem>>, vector<2x128xf32>
      tpu.vector_store %arg12[%c0_46, %c0_47], %76 {strides = array<i32>} : memref<2x128xf32, #tpu.memory_space<vmem>>, vector<2x128xf32>,
    } else {
    }
    return
  }
  func.func @transform_0(%arg0: i32, %arg1: i32) -> (i32, i32) {
    %c0_i32 = arith.constant 0 : i32
    %c0_i32_0 = arith.constant 0 : i32
    %c0_i32_1 = arith.constant 0 : i32
    return %c0_i32, %c0_i32_0 : i32, i32
  }
  func.func @transform_1(%arg0: i32, %arg1: i32) -> (i32, i32) {
    %c0_i32 = arith.constant 0 : i32
    %c0_i32_0 = arith.constant 0 : i32
    %c0_i32_1 = arith.constant 0 : i32
    return %c0_i32, %c0_i32_0 : i32, i32
  }
  func.func @transform_2(%arg0: i32, %arg1: i32) -> (i32, i32) {
    %c0_i32 = arith.constant 0 : i32
    %c0_i32_0 = arith.constant 0 : i32
    %c0_i32_1 = arith.constant 0 : i32
    return %c0_i32, %c0_i32_0 : i32, i32
  }
  func.func @transform_3(%arg0: i32, %arg1: i32) -> (i32, i32) {
    %c0_i32 = arith.constant 0 : i32
    %c0_i32_0 = arith.constant 0 : i32
    %c0_i32_1 = arith.constant 0 : i32
    return %c0_i32, %c0_i32_0 : i32, i32
  }
  func.func @transform_4(%arg0: i32, %arg1: i32) -> (i32, i32) {
    %c0_i32 = arith.constant 0 : i32
    %c0_i32_0 = arith.constant 0 : i32
    %c0_i32_1 = arith.constant 0 : i32
    return %c0_i32, %c0_i32_0 : i32, i32
  }
  func.func @transform_5(%arg0: i32, %arg1: i32) -> (i32, i32) {
    %c0_i32 = arith.constant 0 : i32
    %c0_i32_0 = arith.constant 0 : i32
    %c0_i32_1 = arith.constant 0 : i32
    return %c0_i32, %c0_i32_0 : i32, i32
  }
  func.func @transform_6(%arg0: i32, %arg1: i32) -> (i32, i32) {
    %c0_i32 = arith.constant 0 : i32
    %c0_i32_0 = arith.constant 0 : i32
    return %c0_i32, %arg1 : i32, i32
  }
  func.func @transform_7(%arg0: i32, %arg1: i32) -> (i32, i32) {
    %c0_i32 = arith.constant 0 : i32
    %c0_i32_0 = arith.constant 0 : i32
    return %c0_i32, %arg1 : i32, i32
  }
  func.func @transform_8(%arg0: i32, %arg1: i32) -> (i32, i32) {
    %c0_i32 = arith.constant 0 : i32
    %c0_i32_0 = arith.constant 0 : i32
    %c0_i32_1 = arith.constant 0 : i32
    return %c0_i32, %c0_i32_0 : i32, i32
  }
  func.func @transform_9(%arg0: i32, %arg1: i32) -> (i32, i32) {
    %c0_i32 = arith.constant 0 : i32
    %c0_i32_0 = arith.constant 0 : i32
    %c0_i32_1 = arith.constant 0 : i32
    return %c0_i32, %c0_i32_0 : i32, i32
  }
}

</mosaic_0001>

<bundles_post_ra>
// kernel: greedy_generate.3
= control target key start
LH: loop header
LB: loop body
LE: loop exit
PB: predicated region body
PF: predicated region fallthrough
CT: control target
= control target key end

     0   :  { %v229_v0 = vmov 0.0   ;;  %vm230_vm0 = vmmov 0   ;;  %s284_s1 = inlined_call_operand.vmem [shape: bf16[128,128], index: 1, kind: input, shape index: {}]   ;;  %s285_s0 = inlined_call_operand.vmem [shape: bf16[16,128], index: 0, kind: input, shape index: {}]   ;;  %s286_s2 = inlined_call_operand.vmem [shape: f32[1,128], index: 2, kind: input, shape index: {}]   ;;  %s287_s3 = inlined_call_operand.vmem [shape: bf16[16,128], index: 3, kind: output, shape index: {}]  }
   0x1   :  { %198 = vmatprep.subr.bf16.mxu0 %v229_v0  ;;  %v220_v1 = vld [vmem:[%s284_s1 + $0x38] sm:$0xff]   ;;  %214 = vmatprep.mubr.msk.bf16.mxu0 %vm230_vm0, %v229_v0  ;;  %v221_v2 = vld [vmem:[%s284_s1 + $0x30] sm:$0xff]   ;;  %v222_v3 = vld [vmem:[%s284_s1 + $0x28] sm:$0xff]  }
   0x2   :  { %199 = vmatpush3.bf16.msra.mxu0 %v220_v1  ;;  %v223_v4 = vld [vmem:[%s284_s1 + $0x20] sm:$0xff]   ;;  %v224_v5 = vld [vmem:[%s284_s1 + $0x18] sm:$0xff]   ;;  %v225_v6 = vld [vmem:[%s284_s1 + $0x10] sm:$0xff]  }
   0x3   :  { %200 = vmatprep.subr.bf16.mxu0 %v229_v0  ;;  %v226_v7 = vld [vmem:[%s284_s1 + $0x8] sm:$0xff]   ;;  %v227_v8 = vld [vmem:[%s284_s1] sm:$0xff]  }
   0x4   :  { %v228_v9 = vld [vmem:[%s285_s0] sm:$0xff]  }
   0x5   :  { %v179_v11 = vld [vmem:[%s286_s2] ss:$0 sm:$0xff] }
   0x6   :  { %201 = vmatpush3.bf16.msra.mxu0 %v221_v2 }
   0x7   :  { %202 = vmatprep.subr.bf16.mxu0 %v229_v0 }
   0xa   :  { %203 = vmatpush3.bf16.msra.mxu0 %v222_v3 }
   0xb   :  { %204 = vmatprep.subr.bf16.mxu0 %v229_v0 }
   0xe   :  { %205 = vmatpush3.bf16.msra.mxu0 %v223_v4 }
   0xf   :  { %206 = vmatprep.subr.bf16.mxu0 %v229_v0 }
  0x12   :  { %207 = vmatpush3.bf16.msra.mxu0 %v224_v5 }
  0x13   :  { %208 = vmatprep.subr.bf16.mxu0 %v229_v0 }
  0x16   :  { %209 = vmatpush3.bf16.msra.mxu0 %v225_v6 }
  0x17   :  { %210 = vmatprep.subr.bf16.mxu0 %v229_v0 }
  0x1a   :  { %211 = vmatpush3.bf16.msra.mxu0 %v226_v7 }
  0x1b   :  { %212 = vmatprep.subr.bf16.mxu0 %v229_v0 }
  0x1e   :  { %213 = vmatpush3.bf16.msra.mxu0 %v227_v8 }
  0x21   :  { %215 = vmatmul.mubr.bf16.vlgmr.msra.gmra.mxu0 %v228_v9 }
  0xe1   :  { %v129_v10 = vpop.f32.mrf.mxu0 }
  0xe2   :  { %v152_v13 = vadd.f32 %v179_v11, %v129_v10 }
  0xe3   :  { %v216_v12 = vpop.f32.mrf.mxu0 }
  0xe4   :  { %v154_v17 = vmax.f32 %v152_v13, 0.0 }
  0xe5   :  { %v132_v14 = vpop.f32.mrf.mxu0 }
  0xe6   :  { %v153_v15 = vadd.f32 %v179_v11, %v132_v14 }
  0xe7   :  { %v217_v16 = vpop.f32.mrf.mxu0 }
  0xe8   :  { %v155_v18 = vmax.f32 %v153_v15, 0.0 }
  0xea   :  { %v187_v19 = vpack.c.bf16 %v155_v18, %v154_v17 }
  0xec   :  { %188 = vst [vmem:[%s287_s3] sm:$0xff] %v187_v19  }

// kernel: greedy_generate.4
= control target key start
LH: loop header
LB: loop body
LE: loop exit
PB: predicated region body
PF: predicated region fallthrough
CT: control target
= control target key end

     0   :  { %v270_v1 = vmov 0   ;;  %v191_v18 = vlaneseq  ;;  %s351_s1 = inlined_call_operand.vmem [shape: bf16[128,256], index: 1, kind: input, shape index: {}]   ;;  %s352_s0 = inlined_call_operand.vmem [shape: bf16[16,128], index: 0, kind: input, shape index: {}]   ;;  %s353_s2 = inlined_call_operand.vmem [shape: f32[1,256], index: 2, kind: input, shape index: {}]   ;;  %s354_s3 = inlined_call_operand.vmem [shape: bf16[16,256], index: 3, kind: output, shape index: {}]  }
   0x1   :  { %v245_v0 = vld [vmem:[%s351_s1 + $0x74] ss:$8 sps:$4 sm:$0xff]   ;;  %163 = vmatprep.mubr.bf16.mxu0 %v270_v1  ;;  %v247_v2 = vld [vmem:[%s351_s1 + $0x70] ss:$8 sps:$4 sm:$0xff]   ;;  %v248_v3 = vld [vmem:[%s351_s1 + $0x64] ss:$8 sps:$4 sm:$0xff]  }
   0x2   :  { %131 = vmatprep.subr.bf16.mxu0 %v245_v0  ;;  %v250_v4 = vld [vmem:[%s351_s1 + $0x60] ss:$8 sps:$4 sm:$0xff]   ;;  %v251_v5 = vld [vmem:[%s351_s1 + $0x54] ss:$8 sps:$4 sm:$0xff]   ;;  %v253_v6 = vld [vmem:[%s351_s1 + $0x50] ss:$8 sps:$4 sm:$0xff]  }
   0x3   :  { %132 = vmatpush1.bf16.msra.mxu0 %v247_v2  ;;  %v254_v7 = vld [vmem:[%s351_s1 + $0x44] ss:$8 sps:$4 sm:$0xff]   ;;  %v256_v8 = vld [vmem:[%s351_s1 + $0x40] ss:$8 sps:$4 sm:$0xff]   ;;  %v257_v9 = vld [vmem:[%s351_s1 + $0x34] ss:$8 sps:$4 sm:$0xff]  }
   0x4   :  { %133 = vmatprep.subr.bf16.mxu0 %v248_v3  ;;  %v259_v10 = vld [vmem:[%s351_s1 + $0x30] ss:$8 sps:$4 sm:$0xff]   ;;  %v260_v11 = vld [vmem:[%s351_s1 + $0x24] ss:$8 sps:$4 sm:$0xff]   ;;  %v262_v12 = vld [vmem:[%s351_s1 + $0x20] ss:$8 sps:$4 sm:$0xff]  }
   0x5   :  { %v263_v13 = vld [vmem:[%s351_s1 + $0x14] ss:$8 sps:$4 sm:$0xff]   ;;  %v265_v14 = vld [vmem:[%s351_s1 + $0x10] ss:$8 sps:$4 sm:$0xff]   ;;  %v266_v15 = vld [vmem:[%s351_s1 + $0x4] ss:$8 sps:$4 sm:$0xff]  }
   0x6   :  { %v268_v16 = vld [vmem:[%s351_s1] ss:$8 sps:$4 sm:$0xff]   ;;  %v192_v19 = vshrl.u32 %v191_v18, 7 }
   0x7   :  { %134 = vmatpush1.bf16.msra.mxu0 %v250_v4  ;;  %v269_v17 = vld [vmem:[%s352_s0] sm:$0xff]  }
   0x8   :  { %135 = vmatprep.subr.bf16.mxu0 %v251_v5  ;;  %v193_v20 = vsub.s32 0, %v192_v19  ;;  %v197_v21 = vsub.s32 1, %v192_v19  ;;  %v189_v22 = vld [vmem:[%s353_s2] sm:$0x3] }
   0xa   :  { %v194_v23 = vrot.slane %v189_v22, %v193_v20  ;;  %v198_v24 = vrot.slane %v189_v22, %v197_v21 }
   0xb   :  { %136 = vmatpush1.bf16.msra.mxu0 %v253_v6 }
   0xc   :  { %137 = vmatprep.subr.bf16.mxu0 %v254_v7 }
   0xf   :  { %138 = vmatpush1.bf16.msra.mxu0 %v256_v8 }
  0x10   :  { %139 = vmatprep.subr.bf16.mxu0 %v257_v9 }
  0x13   :  { %140 = vmatpush1.bf16.msra.mxu0 %v259_v10 }
  0x14   :  { %141 = vmatprep.subr.bf16.mxu0 %v260_v11 }
  0x17   :  { %142 = vmatpush1.bf16.msra.mxu0 %v262_v12 }
  0x18   :  { %143 = vmatprep.subr.bf16.mxu0 %v263_v13 }
  0x1b   :  { %144 = vmatpush1.bf16.msra.mxu0 %v265_v14 }
  0x1c   :  { %145 = vmatprep.subr.bf16.mxu0 %v266_v15 }
  0x1f   :  { %146 = vmatpush1.bf16.msra.mxu0 %v268_v16 }
  0x22   :  { %164 = vmatmul.mubr.bf16.vlgmr.msra.gmra.mxu0 %v269_v17 }
  0xe2   :  { %v165_v25 = vpop.f32.mrf.mxu0 }
  0xe3   :  { %v201_v27 = vadd.f32 %v194_v23, %v165_v25 }
  0xe4   :  { %v167_v26 = vpop.f32.mrf.mxu0 }
  0xe5   :  { %v202_v28 = vadd.f32 %v198_v24, %v167_v26 }
  0xe6   :  { %v169_v29 = vpop.f32.mrf.mxu0 }
  0xe7   :  { %v242_v30 = vpack.c.bf16 %v202_v28, %v201_v27  ;;  %v203_v32 = vadd.f32 %v194_v23, %v169_v29 }
  0xe8   :  { %v171_v31 = vpop.f32.mrf.mxu0 }
  0xe9   :  { %217 = vst [vmem:[%s354_s3] sm:$0xff] %v242_v30  ;;  %v204_v33 = vadd.f32 %v198_v24, %v171_v31 }
  0xeb   :  { %v243_v34 = vpack.c.bf16 %v204_v33, %v203_v32 }
  0xed   :  { %218 = vst [vmem:[%s354_s3 + $0x8] sm:$0xff] %v243_v34 }

// kernel: greedy_generate.5
= control target key start
LH: loop header
LB: loop body
LE: loop exit
PB: predicated region body
PF: predicated region fallthrough
CT: control target
= control target key end

     0   :  { %15 = vsyncpa [#allocation8], 0  ;;  %s1991_s0 = inlined_call_operand.vmem [shape: f32[128,128], index: 0, kind: input, shape index: {}]   ;;  %s1992_s1 = inlined_call_operand.vmem [shape: bf16[128,256], index: 1, kind: input, shape index: {}]   ;;  %s1993_s2 = inlined_call_operand.vmem [shape: bf16[256,128], index: 2, kind: input, shape index: {}]   ;;  %s1994_s3 = inlined_call_operand.vmem [shape: f32[2,256], index: 3, kind: input, shape index: {}]   ;;  %s1995_s4 = inlined_call_operand.vmem [shape: bf16[128,128], index: 4, kind: input, shape index: {}]   ;;  %s1996_s5 = inlined_call_operand.vmem [shape: f32[1,128], index: 5, kind: input, shape index: {}]   ;;  %s1997_s6 = inlined_call_operand.vmem [shape: bf16[128,128], index: 6, kind: input, shape index: {}]   ;;  %s1998_s7 = inlined_call_operand.vmem [shape: f32[1,128], index: 7, kind: input, shape index: {}]   ;;  %s1999_s8 = inlined_call_operand.hbm [shape: s32[2,6], index: 8, kind: output, shape index: {0}]   ;;  %s2000_s9 = inlined_call_operand.hbm [shape: s32[1,1], index: 9, kind: output, shape index: {1}]  }
   0x1   :  { %16 = vsyncpa [#allocation10], 0  ;;  %s1652_s30 = smov 0   ;;  %s1654_s10 = smov 0  }
   0x2   :  { %s1656_s11 = smov 0  }
   0x3 LB: > { %s1200_s12 = sadd.s32 4294967295, %s1590_s11   ;;  %s34_s13 = sadd.s32 1, %s1586_s10  ;;  %s1590_s11 = sphi %s1656_s11, %s22_s11   ;;  %s1586_s10 = sphi %s1654_s10, %s2003_s10   ;;  %s1582_s30 = sphi %s1652_s30, %s2002_s30  }
   0x4   : > { %p36_p0 = scmp.ge.s32.totalorder %s34_s13, 5  ;;  %p1204_p1 = scmp.ge.s32.totalorder %s1590_s11, 1 }
   0x5   : > { %p301_p2 = scmp.lt.s32.totalorder %s1590_s11, 6 }
   0x6   : > { %s2005_s13 = smov (%p36_p0, %s34_s13), 0 }
   0x7   : > { %p302_p3 = pnand %p1204_p1, %p301_p2 }
   0x8   : > { %p342_p4 = scmp.eq.s32.totalorder (!%p302_p3), %s1582_s30, 0 }
   0x9   : > { %305 = sbr.rel (%p302_p3) target bundleno = 1935 (0x78f), region = 52 }
   0xe   : > { %347 = sbr.rel (!%p342_p4) target bundleno = 21 (0x15), region = 56  ;;  %vm348_vm0 = vcmask (%p342_p4), 1024   ;;  %vm350_vm1 = vcmask (%p342_p4), 0   ;;  %v1206_v0 = vld [vmem:[%s1991_s0 + $0x1] ss:$0 sm:$0xff] (%p342_p4)  ;;  %v1592_v1 = vmov (%p342_p4), 0.0   ;;  %v358_v3 = vlaneseq (%p342_p4) }
   0xf   : > { %349 = vst.msk [vmem:[#allocation6] sm:$0x3] (%p342_p4), %vm348_vm0, %v1592_v1  ;;  %v1593_v2 = vmov (%p342_p4), 1   ;;  %357 = vst [vmem:[#allocation2] sm:$0x3] (%p342_p4), %v1206_v0  ;;  %vm362_vm2 = vcmask (%p342_p4), 41984  }
  0x10   : > { %351 = vst.msk [vmem:[#allocation9] sm:$0x1] (%p342_p4), %vm350_vm1, %v1593_v2  ;;  %v359_v4 = vand.u32 (%p342_p4), 127, %v358_v3  ;;  %v1594_v5 = vmov (%p342_p4), 0  }
  0x12   : > { %vm360_vm3 = vcmp.eq.s32.totalorder (%p342_p4), %v359_v4, 0 }
  0x13   : > { %v361_v6 = vsel %vm360_vm3, 1, %v1594_v5 }
  0x14   : > { %363 = vst.msk [vmem:[#allocation7] sm:$0x3] %vm362_vm2, %v361_v6 }
  0x15 PF: > { %v1450_v7 = vld [vmem:[%s1995_s4 + $0x38] sm:$0xff]   ;;  %v1595_v8 = vmov 0.0   ;;  %v1451_v9 = vld [vmem:[%s1995_s4 + $0x30] sm:$0xff]   ;;  %vm1596_vm4 = vmmov 0   ;;  %v1452_v10 = vld [vmem:[%s1995_s4 + $0x28] sm:$0xff]   ;;  %v1597_v34 = vmov 0  }
  0x16   : > { %1325 = vmatprep.subr.bf16.mxu0 %v1595_v8  ;;  %1341 = vmatprep.mubr.msk.bf16.mxu0 %vm1596_vm4, %v1595_v8  ;;  %v1458_v11 = vld [vmem:[%s1992_s1 + $0x74] ss:$8 sps:$4 sm:$0xff]   ;;  %v1460_v12 = vld [vmem:[%s1992_s1 + $0x70] ss:$8 sps:$4 sm:$0xff]   ;;  %v1453_v13 = vld [vmem:[%s1995_s4 + $0x20] sm:$0xff]   ;;  %vm826_vm5 = vcmask 1024  }
  0x17   : > { %1326 = vmatpush3.bf16.msra.mxu0 %v1450_v7  ;;  %v1461_v14 = vld [vmem:[%s1992_s1 + $0x64] ss:$8 sps:$4 sm:$0xff]   ;;  %577 = vmatprep.subr.bf16.mxu1 %v1458_v11  ;;  %v1463_v15 = vld [vmem:[%s1992_s1 + $0x60] ss:$8 sps:$4 sm:$0xff]   ;;  %v1464_v16 = vld [vmem:[%s1992_s1 + $0x54] ss:$8 sps:$4 sm:$0xff]  }
  0x18   : > { %1327 = vmatprep.subr.bf16.mxu0 %v1595_v8  ;;  %578 = vmatpush1.bf16.msra.mxu1 %v1460_v12  ;;  %v1454_v17 = vld [vmem:[%s1995_s4 + $0x18] sm:$0xff]   ;;  %v1455_v19 = vld [vmem:[%s1995_s4 + $0x10] sm:$0xff]   ;;  %v1467_v20 = vld [vmem:[%s1992_s1 + $0x44] ss:$8 sps:$4 sm:$0xff]   ;;  %828 = vst.msk [vmem:[#allocation5] sm:$0x3] %vm826_vm5, %v1597_v34 }
  0x19   : > { %579 = vmatprep.subr.bf16.mxu1 %v1461_v14  ;;  %v1466_v18 = vld [vmem:[%s1992_s1 + $0x50] ss:$8 sps:$4 sm:$0xff]   ;;  %v1469_v21 = vld [vmem:[%s1992_s1 + $0x40] ss:$8 sps:$4 sm:$0xff]   ;;  %v1470_v22 = vld [vmem:[%s1992_s1 + $0x34] ss:$8 sps:$4 sm:$0xff]   ;;  %609 = vmatprep.mubr.bf16.mxu1 %v1597_v34 }
  0x1a   : > { %v1456_v23 = vld [vmem:[%s1995_s4 + $0x8] sm:$0xff]   ;;  %v1472_v24 = vld [vmem:[%s1992_s1 + $0x30] ss:$8 sps:$4 sm:$0xff]   ;;  %v1457_v26 = vld [vmem:[%s1995_s4] sm:$0xff]   ;;  %1448 = vset.pattern.permute.xlu1 %v1597_v34  ;;  %1449 = vset.pattern.permute.xlu0 %v1597_v34  ;;  %vm634_vm6 = vcmask 1041408   ;;  %s1005_s22 = sadd.s32 1, %s1582_s30 }
  0x1b   : > { %1328 = vmatpush3.bf16.msra.mxu0 %v1451_v9  ;;  %v1473_v25 = vld [vmem:[%s1992_s1 + $0x24] ss:$8 sps:$4 sm:$0xff]   ;;  %v1743_v27 = vld [vmem:[#allocation2] sm:$0x3]  ;;  %v1476_v29 = vld [vmem:[%s1992_s1 + $0x14] ss:$8 sps:$4 sm:$0xff]  }
  0x1c   : > { %1329 = vmatprep.subr.bf16.mxu0 %v1595_v8  ;;  %580 = vmatpush1.bf16.msra.mxu1 %v1463_v15  ;;  %v1475_v28 = vld [vmem:[%s1992_s1 + $0x20] ss:$8 sps:$4 sm:$0xff]   ;;  %v368_v30 = vpack.c.bf16 %v1743_v27, %v1743_v27  ;;  %v1478_v31 = vld [vmem:[%s1992_s1 + $0x10] ss:$8 sps:$4 sm:$0xff]   ;;  %v1479_v32 = vld [vmem:[%s1992_s1 + $0x4] ss:$8 sps:$4 sm:$0xff]  }
  0x1d   : > { %581 = vmatprep.subr.bf16.mxu1 %v1464_v16  ;;  %v1481_v33 = vld [vmem:[%s1992_s1] ss:$8 sps:$4 sm:$0xff]   ;;  %v1482_v55 = vld [vmem:[%s1993_s2 + $0x78] sm:$0xff]   ;;  %v1484_v57 = vld [vmem:[%s1993_s2 + $0x70] sm:$0xff]   ;;  %vm1013_vm13 = vcmask 41984   ;;  %p1956_p5 = scmp.eq.s32.totalorder %s1200_s12, 4 }
  0x1e   : > { %v1207_v35 = vld [vmem:[%s1996_s5] ss:$0 sm:$0xff]  ;;  %v1483_v56 = vld [vmem:[%s1993_s2 + $0x38] sm:$0xff]   ;;  %v1485_v58 = vld [vmem:[%s1993_s2 + $0x30] sm:$0xff]   ;;  %s1600_s23 = smov [#allocation7]   ;;  %vm993_vm15 = vcmask 0  }
  0x1f   : > { %1330 = vmatpush3.bf16.msra.mxu0 %v1452_v10  ;;  %v1232_v42 = vld.sshfl [vmem:[%s1994_s3] sm:$0x33 pattern:$0x76325410]  ;;  %v1486_v59 = vld [vmem:[%s1993_s2 + $0x68] sm:$0xff]   ;;  %v1490_v10 = vld [vmem:[%s1993_s2 + $0x58] sm:$0xff]  }
  0x20   : > { %1331 = vmatprep.subr.bf16.mxu0 %v1595_v8  ;;  %582 = vmatpush1.bf16.msra.mxu1 %v1466_v18  ;;  %v629_v45 = vcombine.high %v1232_v42, %v1232_v42  ;;  %v1487_v60 = vld [vmem:[%s1993_s2 + $0x28] sm:$0xff]   ;;  %v1488_v61 = vld [vmem:[%s1993_s2 + $0x60] sm:$0xff]   ;;  %v1491_v11 = vld [vmem:[%s1993_s2 + $0x18] sm:$0xff]   ;;  %s1115_s24 = sshll.u32 %s1600_s23, 4  ;;  %s1601_s25 = smov [#allocation9]   ;;  %s1116_s24 = int_to_ptr.vmem [resolvable:$true] %s1115_s24 }
  0x21   : > { %583 = vmatprep.subr.bf16.mxu1 %v1467_v20  ;;  %v1489_v9 = vld [vmem:[%s1993_s2 + $0x20] sm:$0xff]   ;;  %v1492_v12 = vld [vmem:[%s1993_s2 + $0x50] sm:$0xff]   ;;  %v1494_v14 = vld [vmem:[%s1993_s2 + $0x48] sm:$0xff]   ;;  %s1126_s26 = sshll.u32 %s1601_s25, 4  ;;  %s1512_s27 = scalar_lea.vmem %s1116_s24, 32  ;;  %s1127_s26 = int_to_ptr.vmem [resolvable:$true] %s1126_s26 }
  0x22   : > { %v1495_v15 = vld [vmem:[%s1993_s2 + $0x8] sm:$0xff]   ;;  %v1496_v16 = vld [vmem:[%s1993_s2 + $0x40] sm:$0xff]   ;;  %v1498_v18 = vld [vmem:[%s1997_s6 + $0x38] sm:$0xff]   ;;  %p1513_p6 = scmp.ne.s32.totalorder %s1116_s24, %s1512_s27  ;;  %p1519_p9 = scmp.lt.s32.totalorder %s1116_s24, %s1116_s24 }
  0x23   : > { %1332 = vmatpush3.bf16.msra.mxu0 %v1453_v13  ;;  %v1493_v13 = vld [vmem:[%s1993_s2 + $0x10] sm:$0xff]   ;;  %v1500_v20 = vld [vmem:[%s1997_s6 + $0x28] sm:$0xff]   ;;  %p1520_p10 = scmp.lt.s32.totalorder %s1512_s27, %s1512_s27 }
  0x24   : > { %1333 = vmatprep.subr.bf16.mxu0 %v1595_v8  ;;  %584 = vmatpush1.bf16.msra.mxu1 %v1469_v21  ;;  %v1501_v21 = vld [vmem:[%s1997_s6 + $0x20] sm:$0xff]   ;;  %p1514_p7 = pnand %p1513_p6, %p1956_p5 }
  0x25   : > { %585 = vmatprep.subr.bf16.mxu1 %v1470_v22  ;;  %p1521_p11 = por %p1520_p10, %p1519_p9 }
  0x26   : > { %p1515_p8 = pneg %p1514_p7 }
  0x27   : > { %1334 = vmatpush3.bf16.msra.mxu0 %v1454_v17  ;;  %v1497_v17 = vld [vmem:[%s1993_s2] sm:$0xff]  }
  0x28   : > { %1335 = vmatprep.subr.bf16.mxu0 %v1595_v8  ;;  %586 = vmatpush1.bf16.msra.mxu1 %v1472_v24  ;;  %p1522_p12 = pnand %p1521_p11, %p1515_p8 }
  0x29   : > { %587 = vmatprep.subr.bf16.mxu1 %v1473_v25 }
  0x2b   : > { %1336 = vmatpush3.bf16.msra.mxu0 %v1455_v19  ;;  %v1499_v19 = vld [vmem:[%s1997_s6 + $0x30] sm:$0xff]  }
  0x2c   : > { %1337 = vmatprep.subr.bf16.mxu0 %v1595_v8  ;;  %588 = vmatpush1.bf16.msra.mxu1 %v1475_v28 }
  0x2d   : > { %589 = vmatprep.subr.bf16.mxu1 %v1476_v29  ;;  %v1502_v29 = vld [vmem:[%s1997_s6 + $0x18] sm:$0xff]  }
  0x2f   : > { %1338 = vmatpush3.bf16.msra.mxu0 %v1456_v23 }
  0x30   : > { %1339 = vmatprep.subr.bf16.mxu0 %v1595_v8  ;;  %590 = vmatpush1.bf16.msra.mxu1 %v1478_v31  ;;  %v1504_v31 = vld [vmem:[%s1997_s6 + $0x8] sm:$0xff]  }
  0x31   : > { %591 = vmatprep.subr.bf16.mxu1 %v1479_v32  ;;  %v1505_v32 = vld [vmem:[%s1997_s6] sm:$0xff]  }
  0x33   : > { %1340 = vmatpush3.bf16.msra.mxu0 %v1457_v26 }
  0x34   : > { %592 = vmatpush1.bf16.msra.mxu1 %v1481_v33  ;;  %1277 = vmatprep.subr.bf16.mxu0 %v1482_v55 }
  0x35   : > { %1345 = vmatprep.subr.bf16.mxu1 %v1595_v8 }
  0x36   : > { %1342 = vmatmul.mubr.bf16.vlgmr.msra.gmra.mxu0 %v368_v30  ;;  %v1503_v30 = vld [vmem:[%s1997_s6 + $0x10] sm:$0xff]  }
  0x37   : > { %1278 = vmatpush3.bf16.msra.mxu0 %v1483_v56 }
  0x38   : > { %1279 = vmatprep.subr.bf16.mxu0 %v1484_v57 }
  0x3b   : > { %1280 = vmatpush3.bf16.msra.mxu0 %v1485_v58 }
  0x3c   : > { %1281 = vmatprep.subr.bf16.mxu0 %v1486_v59 }
  0x3f   : > { %1282 = vmatpush3.bf16.msra.mxu0 %v1487_v60 }
  0x40   : > { %1283 = vmatprep.subr.bf16.mxu0 %v1488_v61 }
  0x43   : > { %1284 = vmatpush3.bf16.msra.mxu0 %v1489_v9  ;;  %v1026_v9 = vld [vmem:[%s1991_s0 + $0x28] sm:$0xff] }
  0x44   : > { %1285 = vmatprep.subr.bf16.mxu0 %v1490_v10  ;;  %v1025_v10 = vld [vmem:[%s1991_s0 + $0x20] sm:$0xff] }
  0x47   : > { %1286 = vmatpush3.bf16.msra.mxu0 %v1491_v11  ;;  %v1024_v11 = vld [vmem:[%s1991_s0 + $0x18] sm:$0xff] }
  0x48   : > { %1287 = vmatprep.subr.bf16.mxu0 %v1492_v12  ;;  %v1023_v12 = vld [vmem:[%s1991_s0 + $0x10] sm:$0xff] }
  0x4b   : > { %1288 = vmatpush3.bf16.msra.mxu0 %v1493_v13  ;;  %v1022_v13 = vld [vmem:[%s1991_s0 + $0x8] sm:$0xff] }
  0x4c   : > { %1289 = vmatprep.subr.bf16.mxu0 %v1494_v14  ;;  %v981_v14 = vld [vmem:[#allocation6] sm:$0x3] }
  0x4f   : > { %1290 = vmatpush3.bf16.msra.mxu0 %v1495_v15  ;;  %v982_v15 = vsel %vm826_vm5, %v981_v14, inf }
  0x50   : > { %1291 = vmatprep.subr.bf16.mxu0 %v1496_v16  ;;  %v983_v16 = vrot.slane %v982_v15, 4 }
  0x53   : > { %1292 = vmatpush3.bf16.msra.mxu0 %v1497_v17  ;;  %v984_v17 = vmin.f32 %v982_v15, %v983_v16 }
  0x54   : > { %1365 = vmatprep.subr.mxu0 %v1595_v8 }
  0xf6   : > { %v474_v36 = vpop.f32.mrf.mxu0 }
  0xf7   : > { %v475_v37 = vadd.f32 %v1207_v35, %v474_v36 }
  0xf8   : > { %v1343_v38 = vpop.f32.mrf.mxu0 }
  0xf9   : > { %v480_v39 = vpack.c.bf16 %v475_v37, %v475_v37 }
  0xfa   : > { %v477_v40 = vpop.f32.mrf.mxu0 }
  0xfb   : > { %610 = vmatmul.mubr.bf16.vlgmr.msra.gmra.mxu1 %v480_v39 }
  0xfc   : > { %v1344_v41 = vpop.f32.mrf.mxu0  ;;  %1361 = vmatprep.mubr.msk.bf16.mxu1 %vm1596_vm4, %v1595_v8  ;;  %1346 = vmatpush3.bf16.msra.mxu1 %v1498_v18  ;;  %v985_v18 = vrot.slane %v984_v17, 2 }
  0xfd   : > { %1347 = vmatprep.subr.bf16.mxu1 %v1595_v8  ;;  %v1598_v41 = vmov -inf  }
  0xfe   : > { %827 = vst.msk [vmem:[#allocation4] sm:$0x3] %vm826_vm5, %v1598_v41  ;;  %v1599_v41 = vmov 1.0  }
 0x100   : > { %1348 = vmatpush3.bf16.msra.mxu1 %v1499_v19 }
 0x101   : > { %1349 = vmatprep.subr.bf16.mxu1 %v1595_v8 }
 0x104   : > { %1350 = vmatpush3.bf16.msra.mxu1 %v1500_v20  ;;  %v986_v20 = vmin.f32 %v984_v17, %v985_v18 }
 0x105   : > { %1351 = vmatprep.subr.bf16.mxu1 %v1595_v8 }
 0x108   : > { %1352 = vmatpush3.bf16.msra.mxu1 %v1501_v21 }
 0x109   : > { %1353 = vmatprep.subr.bf16.mxu1 %v1595_v8 }
 0x10c   : > { %1354 = vmatpush3.bf16.msra.mxu1 %v1502_v29 }
 0x10d   : > { %1355 = vmatprep.subr.bf16.mxu1 %v1595_v8 }
 0x110   : > { %1356 = vmatpush3.bf16.msra.mxu1 %v1503_v30  ;;  %v1021_v30 = vld [vmem:[%s1991_s0] sm:$0xff] }
 0x111   : > { %1357 = vmatprep.subr.bf16.mxu1 %v1595_v8 }
 0x114   : > { %1358 = vmatpush3.bf16.msra.mxu1 %v1504_v31 }
 0x115   : > { %1359 = vmatprep.subr.bf16.mxu1 %v1595_v8 }
 0x118   : > { %1360 = vmatpush3.bf16.msra.mxu1 %v1505_v32  ;;  %v995_v32 = vld [vmem:[#allocation6] sm:$0x3] }
 0x1bb   : > { %v611_v43 = vpop.f32.mrf.mxu1 }
 0x1bc   : > { %v618_v44 = vmul.f32 0.17677669, %v611_v43 }
 0x1bd   : > { %v613_v46 = vpop.f32.mrf.mxu1 }
 0x1be   : > { %v632_v47 = vadd.f32 %v1232_v42, %v618_v44  ;;  %v619_v48 = vmul.f32 0.17677669, %v613_v46  ;;  %v1249_v42 = vld [vmem:[%s1998_s7] ss:$0 sm:$0xff] }
 0x1bf   : > { %v615_v49 = vpop.f32.mrf.mxu1 }
 0x1c0   : > { %v633_v50 = vadd.f32 %v629_v45, %v619_v48  ;;  %v635_v52 = vsel %vm634_vm6, %v632_v47, -inf  ;;  %v946_v48 = vlaneseq  ;;  %v1865_v49 = vld [vmem:[#allocation4] sm:$0x3] }
 0x1c1   : > { %v616_v51 = vpop.f32.mrf.mxu1 }
 0x1c2   : > { %v636_v53 = vsel %vm634_vm6, %v633_v50, -inf  ;;  %v974_v51 = vld [vmem:[#allocation4] sm:$0x3] }
 0x1c3   : > { %v637_v54 = vmax.f32 %v635_v52, %v636_v53 }
 0x1c5   : > { %638 = vmax.xlane.f32.xlu0 %v637_v54 }
 0x24e   : > { %v639_v62 = vpop.xlane.xlu0 %638 }
 0x24f   : > { %v640_v63 = vsub.f32 %v632_v47, %v639_v62  ;;  %v641_v0 = vsub.f32 %v633_v50, %v639_v62  ;;  %v1867_v50 = vand.u32 127, %v946_v48  ;;  %v1036_v62 = vld [vmem:[%s1991_s0 + $0x78] sm:$0xff] }
 0x251   : > { %v642_v1 = vmul.f32 1.442695, %v640_v63  ;;  %v644_v2 = vmul.f32 1.442695, %v641_v0  ;;  %v1035_v63 = vld [vmem:[%s1991_s0 + $0x70] sm:$0xff]  ;;  %v1034_v0 = vld [vmem:[%s1991_s0 + $0x68] sm:$0xff] }
 0x253   : > { %1506 = vpow2.f32 %v642_v1  ;;  %v1033_v1 = vld [vmem:[%s1991_s0 + $0x60] sm:$0xff] }
 0x254   : > { %1508 = vpow2.f32 %v644_v2  ;;  %v1032_v2 = vld [vmem:[%s1991_s0 + $0x58] sm:$0xff] }
 0x260   : > { %v1507_v3 = vpop.eup %1506 }
 0x261   : > { %v1509_v4 = vpop.eup %1508  ;;  %v646_v5 = vsel %vm634_vm6, %v1507_v3, 0.0 }
 0x262   : > { %v647_v6 = vsel %vm634_vm6, %v1509_v4, 0.0 }
 0x263   : > { %v648_v7 = vadd.f32 %v647_v6, %v646_v5  ;;  %v1029_v5 = vld [vmem:[%s1991_s0 + $0x40] sm:$0xff]  ;;  %v1028_v6 = vld [vmem:[%s1991_s0 + $0x38] sm:$0xff] }
 0x265   : > { %649 = vadd.xlane.f32.xlu0 %v648_v7  ;;  %v1027_v7 = vld [vmem:[%s1991_s0 + $0x30] sm:$0xff] }
 0x2ee   : > { %v650_v22 = vpop.xlane.xlu0 %649 }
 0x2ef   : > { %1510 = vrcp.f32 %v650_v22 }
 0x2fc   : > { %v1511_v23 = vpop.eup %1510 }
 0x2fd   : > { %v653_v24 = vmul.f32 %v1511_v23, %v1509_v4  ;;  %v652_v25 = vmul.f32 %v1511_v23, %v1507_v3  ;;  %v1031_v3 = vld [vmem:[%s1991_s0 + $0x50] sm:$0xff]  ;;  %v1030_v4 = vld [vmem:[%s1991_s0 + $0x48] sm:$0xff] }
 0x2ff   : > { %v655_v26 = vpack.c.bf16 %v653_v24, %v653_v24  ;;  %v654_v28 = vpack.c.bf16 %v652_v25, %v652_v25  ;;  %v970_v24 = vld [vmem:[#allocation5] sm:$0x3] }
 0x301   : > { %816 = vmatprep.mubr.bf16.mxu0 %v655_v26  ;;  %v987_v26 = vrot.slane %v986_v20, 1 }
 0x302   : > { %817 = vmatmul.mubr.bf16.vlgmr.msra.gmra.mxu0 %v654_v28 }
 0x303   : > { %1397 = vmatprep.mubr.msk.f32.mxu0 %vm1596_vm4, %v1595_v8  ;;  %1366 = vmatpush3.msra.mxu0 %v1036_v62  ;;  %v988_v29 = vmin.f32 %v986_v20, %v987_v26 }
 0x304   : > { %1367 = vmatprep.subr.mxu0 %v1595_v8 }
 0x305   : > { %1368 = vmatpush3.msra.mxu0 %v1035_v63  ;;  %vm1001_vm10 = vcmp.gt.f32.partialorder %v988_v29, 0.5 }
 0x306   : > { %1369 = vmatprep.subr.mxu0 %v1595_v8 }
 0x307   : > { %1370 = vmatpush3.msra.mxu0 %v1034_v0 }
 0x308   : > { %1371 = vmatprep.subr.mxu0 %v1595_v8 }
 0x309   : > { %1372 = vmatpush3.msra.mxu0 %v1033_v1 }
 0x30a   : > { %1373 = vmatprep.subr.mxu0 %v1595_v8 }
 0x30b   : > { %1374 = vmatpush3.msra.mxu0 %v1032_v2 }
 0x30c   : > { %1375 = vmatprep.subr.mxu0 %v1595_v8 }
 0x30d   : > { %1376 = vmatpush3.msra.mxu0 %v1031_v3 }
 0x30e   : > { %1377 = vmatprep.subr.mxu0 %v1595_v8 }
 0x30f   : > { %1378 = vmatpush3.msra.mxu0 %v1030_v4 }
 0x310   : > { %1379 = vmatprep.subr.mxu0 %v1595_v8 }
 0x311   : > { %1380 = vmatpush3.msra.mxu0 %v1029_v5 }
 0x312   : > { %1381 = vmatprep.subr.mxu0 %v1595_v8 }
 0x313   : > { %1382 = vmatpush3.msra.mxu0 %v1028_v6 }
 0x314   : > { %1383 = vmatprep.subr.mxu0 %v1595_v8 }
 0x315   : > { %1384 = vmatpush3.msra.mxu0 %v1027_v7 }
 0x316   : > { %1385 = vmatprep.subr.mxu0 %v1595_v8 }
 0x317   : > { %1386 = vmatpush3.msra.mxu0 %v1026_v9 }
 0x318   : > { %1387 = vmatprep.subr.mxu0 %v1595_v8 }
 0x319   : > { %1388 = vmatpush3.msra.mxu0 %v1025_v10 }
 0x31a   : > { %1389 = vmatprep.subr.mxu0 %v1595_v8 }
 0x31b   : > { %1390 = vmatpush3.msra.mxu0 %v1024_v11 }
 0x31c   : > { %1391 = vmatprep.subr.mxu0 %v1595_v8 }
 0x31d   : > { %1392 = vmatpush3.msra.mxu0 %v1023_v12 }
 0x31e   : > { %1393 = vmatprep.subr.mxu0 %v1595_v8 }
 0x31f   : > { %1394 = vmatpush3.msra.mxu0 %v1022_v13 }
 0x320   : > { %1395 = vmatprep.subr.mxu0 %v1595_v8 }
 0x321   : > { %1396 = vmatpush3.msra.mxu0 %v1021_v30 }
 0x3c2   : > { %v1293_v33 = vpop.f32.mrf.mxu0 }
 0x3c4   : > { %v1294_v34 = vpop.f32.mrf.mxu0 }
 0x3c5   : > { %v1295_v35 = vadd.f32 %v1294_v34, %v1293_v33 }
 0x3c6   : > { %v1296_v36 = vpop.f32.mrf.mxu0 }
 0x3c7   : > { %v824_v37 = vadd.f32 %v1295_v35, %v1743_v27  ;;  %v1006_v36 = vstv %s1005_s22 }
 0x3c8   : > { %v1297_v38 = vpop.f32.mrf.mxu0  ;;  %vm1007_vm12 = vcmp.eq.s32.totalorder %v1867_v50, %v1006_v36 }
 0x3c9   : > { %825 = vst [vmem:[#allocation3] sm:$0x3] %v824_v37  ;;  %v1008_v37 = vld [vmem:[#allocation7] sm:$0x3] }
 0x3d0   : > { %v829_v39 = vld [vmem:[#allocation3] sm:$0x3] }
 0x3d1   : > { %v830_v40 = vpack.c.bf16 %v829_v39, %v829_v39 }
 0x3d3   : > { %1362 = vmatmul.mubr.bf16.vlgmr.msra.gmra.mxu1 %v830_v40 }
 0x493   : > { %v936_v43 = vpop.f32.mrf.mxu1 }
 0x494   : > { %v937_v44 = vadd.f32 %v1249_v42, %v936_v43 }
 0x495   : > { %v1363_v45 = vpop.f32.mrf.mxu1 }
 0x496   : > { %v943_v46 = vsel %vm634_vm6, %v937_v44, -inf }
 0x497   : > { %944 = vmax.xlane.f32.xlu1 %v943_v46  ;;  %v939_v47 = vpop.f32.mrf.mxu1 }
 0x499   : > { %v1364_v27 = vpop.f32.mrf.mxu1 }
 0x520   : > { %v1869_v52 = vpop.xlane.xlu1 %944 }
 0x521   : > { %vm948_vm7 = vcmp.eq.f32.partialorder %v937_v44, %v1869_v52  ;;  %vm969_vm8 = vcmp.gt.f32.partialorder %v1869_v52, %v1865_v49  ;;  %v989_v44 = vld [vmem:[#allocation9] sm:$0x1] }
 0x522   : > { %v975_v53 = vsel %vm969_vm8, %v1869_v52, %v974_v51  ;;  %v949_v54 = vsel %vm948_vm7, %v1867_v50, 1073741824 }
 0x523   : > { %976 = vst.msk [vmem:[#allocation4] sm:$0x3] %vm826_vm5, %v975_v53  ;;  %v950_v55 = vsel %vm634_vm6, %v949_v54, 2147483647 }
 0x524   : > { %v952_v56 = vshra.s32 %v950_v55, 16  ;;  %v951_v58 = vand.u32 65535, %v950_v55 }
 0x526   : > { %v954_v57 = vcvt.s32.f32 %v952_v56  ;;  %v953_v60 = vcvt.s32.f32 %v951_v58 }
 0x528   : > { %955 = vmin.xlane.f32.xlu1 %v954_v57 }
 0x5b1   : > { %v956_v59 = vpop.xlane.xlu1 %955 }
 0x5b2   : > { %vm957_vm9 = vcmp.eq.f32.partialorder %v954_v57, %v956_v59  ;;  %v962_v19 = vcvt.f32.s32 %v956_v59 }
 0x5b3   : > { %v958_v61 = vsel %vm957_vm9, %v953_v60, inf }
 0x5b4   : > { %959 = vmin.xlane.f32.xlu0 %v958_v61  ;;  %v963_v22 = vshll.u32 %v962_v19, 16 }
 0x63d   : > { %v960_v21 = vpop.xlane.xlu0 %959 }
 0x63e   : > { %v961_v23 = vcvt.f32.s32 %v960_v21 }
 0x640   : > { %v964_v25 = vadd.s32 %v963_v22, %v961_v23 }
 0x642   : > { %v971_v28 = vsel %vm969_vm8, %v964_v25, %v970_v24 }
 0x643   : > { %973 = vst.msk [vmem:[#allocation5] sm:$0x3] %vm826_vm5, %v971_v28 }
 0x64a   : > { %v980_v31 = vld [vmem:[#allocation5] sm:$0x3] }
 0x64b   : > { %1016 = vperm.xlu1 %1448, %v980_v31   ;;  %vm996_vm11 = vcmp.eq.s32.totalorder %v980_v31, 2  ;;  %v1004_v33 = vsel %vm1001_vm10, 0, %v980_v31 }
 0x64c   : > { %v1258_v34 = vsel %vm996_vm11, 1.0, %v1595_v8  ;;  %1010 = vperm.xlu0 %1449, %v1004_v33   ;;  %v990_v8 = vsub.f32 1.0, %v988_v29 }
 0x64d   : > { %v999_v35 = vmax.f32 %v995_v32, %v1258_v34 }
 0x64e   : > { %v1400_v42 = vtrunc.f32 %v990_v8 }
 0x64f   : > { %1000 = vst.msk [vmem:[#allocation6] sm:$0x3] %vm826_vm5, %v999_v35 }
 0x650   : > { %v1401_v43 = vcvt.f32.s32 %v1400_v42 }
 0x652   : > { %v992_v45 = vadd.s32 %v1401_v43, %v989_v44 }
 0x654   : > { %994 = vst.msk [vmem:[#allocation9] sm:$0x1] %vm993_vm15, %v992_v45 }
 0x6c6   : > { %v1017_v38 = vpop.permute.xlu1 %1016 }
 0x6c7   : > { %vm1018_vm14 = vcmp.eq.s32.totalorder %v1867_v50, %v1017_v38  ;;  %v1011_v39 = vpop.permute.xlu0 %1010 }
 0x6c8   : > { %v1012_v40 = vsel %vm1007_vm12, %v1011_v39, %v1008_v37  ;;  %1398 = vmatmul.mubr.msk.f32.vlgmr.msra.gmra.mxu0 %vm1018_vm14, %v1599_v41 }
 0x6c9   : > { %1014 = vst.msk [vmem:[#allocation7] sm:$0x3] %vm1013_vm13, %v1012_v40 }
 0x6ca   : > { %1525 = shalt.err (!%p1522_p12)
}
 0x6cb   : > { %1403 = dma.vmem_to_hbm [thread:$0]  (%p1956_p5), %s1116_s24, 32, %s1999_s8, [#allocation8]  }
 0x6cc   : > { %s1536_s29 = scalar_lea.vmem %s1127_s26, 16  ;;  %s1542_s14 = scalar_lea.vmem %s1127_s26, 32 }
 0x6cd   : > { %p1537_p13 = scmp.ne.s32.totalorder %s1127_s26, %s1536_s29  ;;  %p1543_p2 = scmp.lt.s32.totalorder %s1127_s26, %s1127_s26 }
 0x6ce   : > { %p1544_p3 = scmp.lt.s32.totalorder %s1542_s14, %s1536_s29 }
 0x6cf   : > { %p1538_p0 = pnand %p1537_p13, %p1956_p5 }
 0x6d0   : > { %p1545_p4 = por %p1544_p3, %p1543_p2 }
 0x6d1   : > { %p1539_p1 = pneg %p1538_p0 }
 0x6d3   : > { %p1546_p6 = pnand %p1545_p4, %p1539_p1 }
 0x6d5   : > { %1549 = shalt.err (!%p1546_p6)
}
 0x6d6   : > { %1405 = dma.vmem_to_hbm [thread:$0]  (%p1956_p5), %s1127_s26, 16, %s2000_s9, [#allocation10]  }
 0x788   : > { %v1103_v46 = vpop.f32.mrf.mxu0 }
 0x789   : > { %1107 = vst [vmem:[#allocation2] sm:$0x3] %v1103_v46 }
 0x78a   : > { %v1399_v47 = vpop.f32.mrf.mxu0 }
 0x78b   : > { %1573 = dma.done.wait (%p1956_p5), [#allocation8], 32  }
 0x78c   : > { %1575 = vsyncadd (%p1956_p5), [#allocation8], 4294967264 }
 0x78d   : > { %1577 = dma.done.wait (%p1956_p5), [#allocation10], 16  }
 0x78e   : > { %1579 = vsyncadd (%p1956_p5), [#allocation10], 4294967280 }
 0x78f PF: > { %s22_s11 = sadd.s32 1, %s1590_s11   ;;  %s2002_s30 = smov %s1586_s10 }
 0x790   : > { %p19_p7 = scmp.ge.s32.totalorder %s22_s11, 7   ;;  %s2003_s10 = smov %s2005_s13 }
 0x792   :  { %21 = sbr.rel (!%p19_p7) target bundleno = 3 (0x3), region = 102 }
 0x797   :  { %1143 = vsyncpa [#allocation8], 1 }
 0x798   :  { %1145 = vsyncpa [#allocation8 + $0x1], 1 }
 0x799   :  { %1146 = vsyncpa [#allocation10], 1 }

</bundles_post_ra>
